<compile_context>
chip_gen: v7x
topology: tpu7x:2x2x1
jax: 0.10.0
libtpu: 0.0.40
codegen_flags: <defaults>
</compile_context>

<pallas_src>
import jax
import jax.numpy as jnp
from jax import lax
from jax.experimental import pallas as pl
from jax.experimental.pallas import tpu as pltpu


def _gru_fc_kernel(gx_ref, wh_ref, bhn_ref, wfc_ref, bfc_ref, out_ref,
                   h_scr, h2_scr):
    """One grid step = Tb GRU time steps for one batch tile + fused FC head.

    gx_ref  : (Tb, Bb, 3*Hp) time-major fused input projections (bias folded)
    wh_ref  : (Hp, 3*Hp)     fused hidden-to-hidden weights (r|z|n columns)
    bhn_ref : (1, Hp)        b_hh of the n gate (stays inside r*(...))
    wfc_ref : (Hp, Hp)       fc weight (transposed)
    bfc_ref : (1, Hp)        fc bias
    out_ref : (1, Tb*Bb, Hp) output block, row = j*Bb + i (time-major)
    h_scr   : (Bb, Hp)       carried hidden state (persists across time blocks)
    h2_scr  : (Tb*Bb, Hp)    staging of the block's hidden states for the FC
    """
    t_blk = pl.program_id(1)

    @pl.when(t_blk == 0)
    def _():
        h_scr[...] = jnp.zeros_like(h_scr)

    Tb, Bb, three_hp = gx_ref.shape
    Hp = three_hp // 3

    wh = wh_ref[...]                                     # (Hp, 3Hp) MXU operand
    # Hoisted broadcast (JAX does not CSE broadcast_in_dim inside the unroll).
    bhn = jnp.broadcast_to(bhn_ref[...].astype(jnp.float32), (Bb, Hp))

    h = h_scr[...]                                       # f32 (Bb, Hp)
    for j in range(Tb):
        # ONE fused (Bb,Hp)x(Hp,3Hp) dot per step on the serial path.
        gh = jnp.dot(h.astype(wh.dtype), wh, preferred_element_type=jnp.float32)
        gx = gx_ref[j].astype(jnp.float32)               # contiguous (Bb, 3Hp)
        r = jax.nn.sigmoid(gx[:, :Hp] + gh[:, :Hp])
        u = jax.nn.sigmoid(gx[:, Hp:2 * Hp] + gh[:, Hp:2 * Hp])
        n = jnp.tanh(gx[:, 2 * Hp:] + r * (gh[:, 2 * Hp:] + bhn))
        h = (1.0 - u) * n + u * h
        h2_scr[pl.ds(j * Bb, Bb), :] = h
    h_scr[...] = h

    # Batched Linear + tanh head: one (Tb*Bb, Hp) x (Hp, Hp) matmul and a single
    # dense block store (no per-step writeback loop).
    wfc = wfc_ref[...]
    y = jnp.tanh(jnp.dot(h2_scr[...].astype(wfc.dtype), wfc,
                         preferred_element_type=jnp.float32)
                 + bfc_ref[...].astype(jnp.float32))
    out_ref[0] = y.astype(out_ref.dtype)


def _vmem_bytes(Bb, Tb, Hp, act_bytes, w_bytes):
    gx_blk = Tb * Bb * 3 * Hp * act_bytes
    out_blk = Tb * Bb * Hp * 4
    weights = (Hp * 3 * Hp + Hp * Hp + 2 * Hp) * w_bytes
    scratch = (Bb * Hp + Tb * Bb * Hp) * 4
    return 2 * (gx_blk + out_blk + weights) + scratch     # 2x = double-buffering


def _pick_tiles(B, T, Hp, act_bytes, w_bytes, budget):
    # Batch tiles: multiples of 8 dividing B (largest first), preferring >= 2
    # batch tiles so the 'parallel' axis can feed both v7x TensorCores.
    divs = sorted((d for d in range(8, min(B, 256) + 1, 8) if B % d == 0),
                  reverse=True)
    cand = ([d for d in divs if B // d >= 2]
            + [d for d in divs if B // d < 2] + [B])
    seen, ordered = set(), []
    for d in cand:
        if d not in seen:
            seen.add(d)
            ordered.append(d)
    for Bb in ordered:
        for tb in (32, 16, 8, 4, 2, 1):                   # hard cap Tb <= 32
            Tb = min(tb, T)
            n_tblk = -(-T // Tb)
            if n_tblk > 1 and (Tb * Bb) % 8 != 0:
                continue                                   # keep out block (8,128)-legal
            if _vmem_bytes(Bb, Tb, Hp, act_bytes, w_bytes) <= budget:
                return Bb, Tb
    return B, T                                            # last-resort single block


def generator_forward(z, params, *, mxu_dtype=jnp.float32,
                      block_b=None, block_t=None,
                      vmem_budget=40 * 2**20):
    """z: (B, T, noise_dim) batch_first. Returns (B, T, hidden_dim)."""
    B, T, Din = z.shape
    w_ih, w_hh, b_ih, b_hh, w_fc, b_fc = (
        params["w_ih"], params["w_hh"], params["b_ih"],
        params["b_hh"], params["w_fc"], params["b_fc"])
    H = w_hh.shape[1]
    Hp = ((H + 127) // 128) * 128                          # lane-aligned hidden dim
    ph = Hp - H

    # ---- fused + padded weight prep (gate order r|z|n), once outside kernel.
    def pad_c(m):      # (X, H) -> (X, Hp)
        return jnp.pad(m, ((0, 0), (0, ph)))

    def pad_rc(m):     # (H, H) -> (Hp, Hp)
        return jnp.pad(m, ((0, ph), (0, ph)))

    wi = jnp.concatenate([pad_c(w_ih[g * H:(g + 1) * H].T) for g in range(3)],
                         axis=1)                            # (Din, 3Hp)
    wh = jnp.concatenate([pad_rc(w_hh[g * H:(g + 1) * H].T) for g in range(3)],
                         axis=1)                            # (Hp, 3Hp)
    b_fused = jnp.concatenate([
        jnp.pad(b_ih[:H] + b_hh[:H], (0, ph)),              # r: b_ih + b_hh folded
        jnp.pad(b_ih[H:2 * H] + b_hh[H:2 * H], (0, ph)),    # z: b_ih + b_hh folded
        jnp.pad(b_ih[2 * H:], (0, ph)),                     # n: b_ih only
    ]).reshape(1, 3 * Hp)
    b_hn = jnp.pad(b_hh[2 * H:], (0, ph)).reshape(1, Hp)    # stays inside r*(...)
    wfc = pad_rc(w_fc.T)                                    # (Hp, Hp)
    bfc = jnp.pad(b_fc, (0, ph)).reshape(1, Hp)

    act_dtype = mxu_dtype
    wh_k = wh.astype(mxu_dtype)
    wfc_k = wfc.astype(mxu_dtype)

    # ---- hoisted fused input projection (off the serial path), time-major.
    zt = jnp.transpose(z, (1, 0, 2)).astype(jnp.float32).reshape(T * B, Din)
    if mxu_dtype == jnp.bfloat16:
        gx = jnp.dot(zt.astype(jnp.bfloat16), wi.astype(jnp.bfloat16),
                     preferred_element_type=jnp.float32) + b_fused
    else:
        gx = jnp.dot(zt, wi, precision=jax.lax.Precision.HIGHEST) + b_fused
    gx = gx.reshape(T, B, 3 * Hp).astype(act_dtype)

    # ---- tile selection against the VMEM budget (v7x: 64 MiB physical).
    act_bytes = jnp.dtype(act_dtype).itemsize
    w_bytes = jnp.dtype(mxu_dtype).itemsize
    if block_b is None or block_t is None:
        auto_b, auto_t = _pick_tiles(B, T, Hp, act_bytes, w_bytes, vmem_budget)
        block_b = block_b if block_b is not None else auto_b
        block_t = block_t if block_t is not None else auto_t
    Bb, Tb = block_b, block_t
    assert B % Bb == 0
    n_tblk = -(-T // Tb)
    Tpad = n_tblk * Tb
    if Tpad != T:                                           # ragged T: pad last block
        gx = jnp.pad(gx, ((0, Tpad - T), (0, 0), (0, 0)))

    est = _vmem_bytes(Bb, Tb, Hp, act_bytes, w_bytes)
    vmem_limit = int(min(64 * 2**20, max(32 * 2**20, est * 3 // 2)))

    grid = (B // Bb, n_tblk)
    gx_spec = pl.BlockSpec((Tb, Bb, 3 * Hp), lambda b, t: (t, b, 0))
    w_spec = lambda shape: pl.BlockSpec(shape, lambda b, t: (0, 0))
    out_spec = pl.BlockSpec((1, Tb * Bb, Hp), lambda b, t: (b, t, 0))

    out = pl.pallas_call(
        _gru_fc_kernel,
        out_shape=jax.ShapeDtypeStruct((B // Bb, Tpad * Bb, Hp), jnp.float32),
        grid_spec=pltpu.PrefetchScalarGridSpec(
            num_scalar_prefetch=0,
            grid=grid,
            in_specs=[
                gx_spec,                   # fused gx (time-major)
                w_spec((Hp, 3 * Hp)),      # fused hidden-to-hidden weights
                w_spec((1, Hp)),           # b_hn
                w_spec((Hp, Hp)),          # fc weight
                w_spec((1, Hp)),           # fc bias
            ],
            out_specs=out_spec,
            scratch_shapes=[
                pltpu.VMEM((Bb, Hp), jnp.float32),         # carried hidden state
                pltpu.VMEM((Tb * Bb, Hp), jnp.float32),    # block hidden staging
            ],
        ),
        compiler_params=pltpu.CompilerParams(
            dimension_semantics=("parallel", "arbitrary"),
            vmem_limit_bytes=vmem_limit),
    )(gx, wh_k, b_hn, wfc_k, bfc)

    # (B/Bb, Tpad*Bb, Hp) -> (B, T, H), cheap wrapper-side layout fixup.
    out = out.reshape(B // Bb, Tpad, Bb, Hp)
    out = jnp.transpose(out, (0, 2, 1, 3)).reshape(B, Tpad, Hp)
    return out[:, :T, :H].astype(z.dtype)


def _reference_forward(z, params):
    """Pure-JAX reference (PyTorch GRU semantics, gate order r|z|n)."""
    w_ih, w_hh, b_ih, b_hh, w_fc, b_fc = (
        params["w_ih"], params["w_hh"], params["b_ih"],
        params["b_hh"], params["w_fc"], params["b_fc"])
    B, T, Din = z.shape
    H = w_hh.shape[1]
    hp = jax.lax.Precision.HIGHEST

    def step(h_prev, x_t):
        gx = jnp.dot(x_t, w_ih.T, precision=hp) + b_ih
        gh = jnp.dot(h_prev, w_hh.T, precision=hp) + b_hh
        r = jax.nn.sigmoid(gx[:, :H] + gh[:, :H])
        u = jax.nn.sigmoid(gx[:, H:2 * H] + gh[:, H:2 * H])
        n = jnp.tanh(gx[:, 2 * H:] + r * gh[:, 2 * H:])
        h_new = (1.0 - u) * n + u * h_prev
        return h_new, h_new

    _, hs = lax.scan(step, jnp.zeros((B, H), jnp.float32),
                     jnp.transpose(z, (1, 0, 2)))
    h2 = jnp.transpose(hs, (1, 0, 2))
    return jnp.tanh(jnp.dot(h2, w_fc.T, precision=hp) + b_fc)


def init_params(key, noise_dim, hidden_dim):
    """Same shapes / U(-1/sqrt(H), 1/sqrt(H)) init as the PyTorch module."""
    H, D = hidden_dim, noise_dim
    bound = 1.0 / (H ** 0.5)
    ks = jax.random.split(key, 6)
    u = lambda k, s: jax.random.uniform(k, s, jnp.float32, -bound, bound)
    return {
        "w_ih": u(ks[0], (3 * H, D)),   # GRU weight_ih_l0
        "w_hh": u(ks[1], (3 * H, H)),   # GRU weight_hh_l0
        "b_ih": u(ks[2], (3 * H,)),     # GRU bias_ih_l0
        "b_hh": u(ks[3], (3 * H,)),     # GRU bias_hh_l0
        "w_fc": u(ks[4], (H, H)),       # Linear weight
        "b_fc": u(ks[5], (H,)),         # Linear bias
    }


if __name__ == "__main__":
    B, T, NOISE, H = 2, 8, 24, 32
    key = jax.random.PRNGKey(0)
    k_in, k_par = jax.random.split(key)
    z = jax.random.normal(k_in, (B, T, NOISE), dtype=jnp.float32)
    params = init_params(k_par, NOISE, H)

    ref = _reference_forward(z, params)

    # f32 MXU path: tight check against the PyTorch-semantics reference.
    out_f32 = jax.block_until_ready(
        jax.jit(lambda zz, pp: generator_forward(zz, pp,
                                                 mxu_dtype=jnp.float32))(z, params))
    assert out_f32.shape == (B, T, H)
    assert jnp.allclose(out_f32, ref, atol=1e-5, rtol=1e-5), "f32 mismatch vs reference"

    # bf16 MXU path (perf configuration from the review): relaxed tolerance.
    out_bf16 = jax.block_until_ready(
        jax.jit(lambda zz, pp: generator_forward(zz, pp,
                                                 mxu_dtype=jnp.bfloat16))(z, params))
    assert out_bf16.shape == (B, T, H)
    assert jnp.allclose(out_bf16, ref, atol=5e-2, rtol=5e-2), "bf16 mismatch vs reference"

    print("KERNEL_OK")
</pallas_src>

<mosaic_0001>
module attributes {stable_mosaic.version = 11 : i64} {
  func.func @_gru_fc_kernel(%arg0: i32, %arg1: i32, %arg2: memref<8x2x384xf32, #tpu.memory_space<vmem>>, %arg3: memref<128x384xf32, #tpu.memory_space<vmem>>, %arg4: memref<1x128xf32, #tpu.memory_space<vmem>>, %arg5: memref<128x128xf32, #tpu.memory_space<vmem>>, %arg6: memref<1x128xf32, #tpu.memory_space<vmem>>, %arg7: memref<1x16x128xf32, #tpu.memory_space<vmem>>, %arg8: memref<2x128xf32, #tpu.memory_space<vmem>>, %arg9: memref<16x128xf32, #tpu.memory_space<vmem>>) attributes {dimension_semantics = [#tpu.dimension_semantics<parallel>, #tpu.dimension_semantics<arbitrary>], iteration_bounds = array<i64: 1, 1>, scalar_prefetch = 0 : i64, scratch_operands = 2 : i64, tpu.core_type = #tpu.core_type<tc>, window_params = [{transform_indices = @transform_0, window_bounds = array<i64: 8, 2, 384>}, {pipeline_mode = #tpu.pipeline_mode<synchronous>, transform_indices = @transform_1, window_bounds = array<i64: 128, 384>}, {pipeline_mode = #tpu.pipeline_mode<synchronous>, transform_indices = @transform_2, window_bounds = array<i64: 1, 128>}, {pipeline_mode = #tpu.pipeline_mode<synchronous>, transform_indices = @transform_3, window_bounds = array<i64: 128, 128>}, {pipeline_mode = #tpu.pipeline_mode<synchronous>, transform_indices = @transform_4, window_bounds = array<i64: 1, 128>}, {transform_indices = @transform_5, window_bounds = array<i64: 1, 16, 128>}]} {
    %c0_i32 = arith.constant 0 : i32
    %0 = arith.cmpi eq, %arg1, %c0_i32 : i32
    %1 = arith.extui %0 : i1 to i32
    %c0_i32_0 = arith.constant 0 : i32
    %2 = arith.cmpi ne, %1, %c0_i32_0 : i32
    scf.if %2 {
      %cst_78 = arith.constant 0.000000e+00 : f32
      %267 = vector.broadcast %cst_78 : f32 to vector<2x128xf32>
      %c0_79 = arith.constant 0 : index
      %c0_80 = arith.constant 0 : index
      %268 = vector.load %arg8[%c0_79, %c0_80] : memref<2x128xf32, #tpu.memory_space<vmem>>, vector<2x128xf32>
      tpu.vector_store %arg8[%c0_79, %c0_80], %267 {strides = array<i32>} : memref<2x128xf32, #tpu.memory_space<vmem>>, vector<2x128xf32>,
    } else {
    }
    %c0 = arith.constant 0 : index
    %c0_1 = arith.constant 0 : index
    %3 = vector.load %arg3[%c0, %c0_1] : memref<128x384xf32, #tpu.memory_space<vmem>>, vector<128x384xf32>
    %c0_2 = arith.constant 0 : index
    %c0_3 = arith.constant 0 : index
    %4 = vector.load %arg4[%c0_2, %c0_3] : memref<1x128xf32, #tpu.memory_space<vmem>>, vector<1x128xf32>
    %5 = vector.shape_cast %4 : vector<1x128xf32> to vector<1x128xf32>
    %6 = vector.broadcast %5 : vector<1x128xf32> to vector<2x128xf32>
    %c0_4 = arith.constant 0 : index
    %c0_5 = arith.constant 0 : index
    %7 = vector.load %arg8[%c0_4, %c0_5] : memref<2x128xf32, #tpu.memory_space<vmem>>, vector<2x128xf32>
    %cst = arith.constant dense<0.000000e+00> : vector<2x384xf32>
    %8 = tpu.matmul %7, %3, %cst {dimension_numbers = #tpu.dot_dimension_numbers<[1], [0], [0], [1], [0, 0, 1, 1], [], []>} : vector<2x128xf32>, vector<128x384xf32>, vector<2x384xf32> -> vector<2x384xf32>
    %c0_6 = arith.constant 0 : index
    %c0_7 = arith.constant 0 : index
    %c0_8 = arith.constant 0 : index
    %9 = vector.load %arg2[%c0_6, %c0_7, %c0_8] : memref<8x2x384xf32, #tpu.memory_space<vmem>>, vector<1x2x384xf32>
    %10 = vector.shape_cast %9 : vector<1x2x384xf32> to vector<2x384xf32>
    %11 = vector.extract_strided_slice %10 {offsets = [0, 0], sizes = [2, 128], strides = [1, 1]} : vector<2x384xf32> to vector<2x128xf32>
    %12 = vector.extract_strided_slice %8 {offsets = [0, 0], sizes = [2, 128], strides = [1, 1]} : vector<2x384xf32> to vector<2x128xf32>
    %13 = arith.addf %11, %12 : vector<2x128xf32>
    %14 = arith.negf %13 : vector<2x128xf32>
    %15 = math.exp %14 : vector<2x128xf32>
    %cst_9 = arith.constant 1.000000e+00 : f32
    %16 = vector.broadcast %cst_9 : f32 to vector<2x128xf32>
    %17 = arith.addf %16, %15 : vector<2x128xf32>
    %18 = arith.divf %16, %17 : vector<2x128xf32>
    %19 = vector.extract_strided_slice %10 {offsets = [0, 128], sizes = [2, 128], strides = [1, 1]} : vector<2x384xf32> to vector<2x128xf32>
    %20 = vector.extract_strided_slice %8 {offsets = [0, 128], sizes = [2, 128], strides = [1, 1]} : vector<2x384xf32> to vector<2x128xf32>
    %21 = arith.addf %19, %20 : vector<2x128xf32>
    %22 = arith.negf %21 : vector<2x128xf32>
    %23 = math.exp %22 : vector<2x128xf32>
    %cst_10 = arith.constant 1.000000e+00 : f32
    %24 = vector.broadcast %cst_10 : f32 to vector<2x128xf32>
    %25 = arith.addf %24, %23 : vector<2x128xf32>
    %26 = arith.divf %24, %25 : vector<2x128xf32>
    %27 = vector.extract_strided_slice %10 {offsets = [0, 256], sizes = [2, 128], strides = [1, 1]} : vector<2x384xf32> to vector<2x128xf32>
    %28 = vector.extract_strided_slice %8 {offsets = [0, 256], sizes = [2, 128], strides = [1, 1]} : vector<2x384xf32> to vector<2x128xf32>
    %29 = arith.addf %28, %6 : vector<2x128xf32>
    %30 = arith.mulf %18, %29 : vector<2x128xf32>
    %31 = arith.addf %27, %30 : vector<2x128xf32>
    %32 = math.tanh %31 : vector<2x128xf32>
    %cst_11 = arith.constant 1.000000e+00 : f32
    %33 = vector.broadcast %cst_11 : f32 to vector<2x128xf32>
    %34 = arith.subf %33, %26 : vector<2x128xf32>
    %35 = arith.mulf %34, %32 : vector<2x128xf32>
    %36 = arith.mulf %26, %7 : vector<2x128xf32>
    %37 = arith.addf %35, %36 : vector<2x128xf32>
    %c0_12 = arith.constant 0 : index
    %c0_13 = arith.constant 0 : index
    %38 = vector.load %arg9[%c0_12, %c0_13] : memref<16x128xf32, #tpu.memory_space<vmem>>, vector<2x128xf32>
    tpu.vector_store %arg9[%c0_12, %c0_13], %37 {strides = array<i32>} : memref<16x128xf32, #tpu.memory_space<vmem>>, vector<2x128xf32>,
    %cst_14 = arith.constant dense<0.000000e+00> : vector<2x384xf32>
    %39 = tpu.matmul %37, %3, %cst_14 {dimension_numbers = #tpu.dot_dimension_numbers<[1], [0], [0], [1], [0, 0, 1, 1], [], []>} : vector<2x128xf32>, vector<128x384xf32>, vector<2x384xf32> -> vector<2x384xf32>
    %c1 = arith.constant 1 : index
    %c0_15 = arith.constant 0 : index
    %c0_16 = arith.constant 0 : index
    %40 = vector.load %arg2[%c1, %c0_15, %c0_16] : memref<8x2x384xf32, #tpu.memory_space<vmem>>, vector<1x2x384xf32>
    %41 = vector.shape_cast %40 : vector<1x2x384xf32> to vector<2x384xf32>
    %42 = vector.extract_strided_slice %41 {offsets = [0, 0], sizes = [2, 128], strides = [1, 1]} : vector<2x384xf32> to vector<2x128xf32>
    %43 = vector.extract_strided_slice %39 {offsets = [0, 0], sizes = [2, 128], strides = [1, 1]} : vector<2x384xf32> to vector<2x128xf32>
    %44 = arith.addf %42, %43 : vector<2x128xf32>
    %45 = arith.negf %44 : vector<2x128xf32>
    %46 = math.exp %45 : vector<2x128xf32>
    %cst_17 = arith.constant 1.000000e+00 : f32
    %47 = vector.broadcast %cst_17 : f32 to vector<2x128xf32>
    %48 = arith.addf %47, %46 : vector<2x128xf32>
    %49 = arith.divf %47, %48 : vector<2x128xf32>
    %50 = vector.extract_strided_slice %41 {offsets = [0, 128], sizes = [2, 128], strides = [1, 1]} : vector<2x384xf32> to vector<2x128xf32>
    %51 = vector.extract_strided_slice %39 {offsets = [0, 128], sizes = [2, 128], strides = [1, 1]} : vector<2x384xf32> to vector<2x128xf32>
    %52 = arith.addf %50, %51 : vector<2x128xf32>
    %53 = arith.negf %52 : vector<2x128xf32>
    %54 = math.exp %53 : vector<2x128xf32>
    %cst_18 = arith.constant 1.000000e+00 : f32
    %55 = vector.broadcast %cst_18 : f32 to vector<2x128xf32>
    %56 = arith.addf %55, %54 : vector<2x128xf32>
    %57 = arith.divf %55, %56 : vector<2x128xf32>
    %58 = vector.extract_strided_slice %41 {offsets = [0, 256], sizes = [2, 128], strides = [1, 1]} : vector<2x384xf32> to vector<2x128xf32>
    %59 = vector.extract_strided_slice %39 {offsets = [0, 256], sizes = [2, 128], strides = [1, 1]} : vector<2x384xf32> to vector<2x128xf32>
    %60 = arith.addf %59, %6 : vector<2x128xf32>
    %61 = arith.mulf %49, %60 : vector<2x128xf32>
    %62 = arith.addf %58, %61 : vector<2x128xf32>
    %63 = math.tanh %62 : vector<2x128xf32>
    %cst_19 = arith.constant 1.000000e+00 : f32
    %64 = vector.broadcast %cst_19 : f32 to vector<2x128xf32>
    %65 = arith.subf %64, %57 : vector<2x128xf32>
    %66 = arith.mulf %65, %63 : vector<2x128xf32>
    %67 = arith.mulf %57, %37 : vector<2x128xf32>
    %68 = arith.addf %66, %67 : vector<2x128xf32>
    %c2 = arith.constant 2 : index
    %c0_20 = arith.constant 0 : index
    %69 = vector.load %arg9[%c2, %c0_20] : memref<16x128xf32, #tpu.memory_space<vmem>>, vector<2x128xf32>
    tpu.vector_store %arg9[%c2, %c0_20], %68 {strides = array<i32>} : memref<16x128xf32, #tpu.memory_space<vmem>>, vector<2x128xf32>,
    %cst_21 = arith.constant dense<0.000000e+00> : vector<2x384xf32>
    %70 = tpu.matmul %68, %3, %cst_21 {dimension_numbers = #tpu.dot_dimension_numbers<[1], [0], [0], [1], [0, 0, 1, 1], [], []>} : vector<2x128xf32>, vector<128x384xf32>, vector<2x384xf32> -> vector<2x384xf32>
    %c2_22 = arith.constant 2 : index
    %c0_23 = arith.constant 0 : index
    %c0_24 = arith.constant 0 : index
    %71 = vector.load %arg2[%c2_22, %c0_23, %c0_24] : memref<8x2x384xf32, #tpu.memory_space<vmem>>, vector<1x2x384xf32>
    %72 = vector.shape_cast %71 : vector<1x2x384xf32> to vector<2x384xf32>
    %73 = vector.extract_strided_slice %72 {offsets = [0, 0], sizes = [2, 128], strides = [1, 1]} : vector<2x384xf32> to vector<2x128xf32>
    %74 = vector.extract_strided_slice %70 {offsets = [0, 0], sizes = [2, 128], strides = [1, 1]} : vector<2x384xf32> to vector<2x128xf32>
    %75 = arith.addf %73, %74 : vector<2x128xf32>
    %76 = arith.negf %75 : vector<2x128xf32>
    %77 = math.exp %76 : vector<2x128xf32>
    %cst_25 = arith.constant 1.000000e+00 : f32
    %78 = vector.broadcast %cst_25 : f32 to vector<2x128xf32>
    %79 = arith.addf %78, %77 : vector<2x128xf32>
    %80 = arith.divf %78, %79 : vector<2x128xf32>
    %81 = vector.extract_strided_slice %72 {offsets = [0, 128], sizes = [2, 128], strides = [1, 1]} : vector<2x384xf32> to vector<2x128xf32>
    %82 = vector.extract_strided_slice %70 {offsets = [0, 128], sizes = [2, 128], strides = [1, 1]} : vector<2x384xf32> to vector<2x128xf32>
    %83 = arith.addf %81, %82 : vector<2x128xf32>
    %84 = arith.negf %83 : vector<2x128xf32>
    %85 = math.exp %84 : vector<2x128xf32>
    %cst_26 = arith.constant 1.000000e+00 : f32
    %86 = vector.broadcast %cst_26 : f32 to vector<2x128xf32>
    %87 = arith.addf %86, %85 : vector<2x128xf32>
    %88 = arith.divf %86, %87 : vector<2x128xf32>
    %89 = vector.extract_strided_slice %72 {offsets = [0, 256], sizes = [2, 128], strides = [1, 1]} : vector<2x384xf32> to vector<2x128xf32>
    %90 = vector.extract_strided_slice %70 {offsets = [0, 256], sizes = [2, 128], strides = [1, 1]} : vector<2x384xf32> to vector<2x128xf32>
    %91 = arith.addf %90, %6 : vector<2x128xf32>
    %92 = arith.mulf %80, %91 : vector<2x128xf32>
    %93 = arith.addf %89, %92 : vector<2x128xf32>
    %94 = math.tanh %93 : vector<2x128xf32>
    %cst_27 = arith.constant 1.000000e+00 : f32
    %95 = vector.broadcast %cst_27 : f32 to vector<2x128xf32>
    %96 = arith.subf %95, %88 : vector<2x128xf32>
    %97 = arith.mulf %96, %94 : vector<2x128xf32>
    %98 = arith.mulf %88, %68 : vector<2x128xf32>
    %99 = arith.addf %97, %98 : vector<2x128xf32>
    %c4 = arith.constant 4 : index
    %c0_28 = arith.constant 0 : index
    %100 = vector.load %arg9[%c4, %c0_28] : memref<16x128xf32, #tpu.memory_space<vmem>>, vector<2x128xf32>
    tpu.vector_store %arg9[%c4, %c0_28], %99 {strides = array<i32>} : memref<16x128xf32, #tpu.memory_space<vmem>>, vector<2x128xf32>,
    %cst_29 = arith.constant dense<0.000000e+00> : vector<2x384xf32>
    %101 = tpu.matmul %99, %3, %cst_29 {dimension_numbers = #tpu.dot_dimension_numbers<[1], [0], [0], [1], [0, 0, 1, 1], [], []>} : vector<2x128xf32>, vector<128x384xf32>, vector<2x384xf32> -> vector<2x384xf32>
    %c3 = arith.constant 3 : index
    %c0_30 = arith.constant 0 : index
    %c0_31 = arith.constant 0 : index
    %102 = vector.load %arg2[%c3, %c0_30, %c0_31] : memref<8x2x384xf32, #tpu.memory_space<vmem>>, vector<1x2x384xf32>
    %103 = vector.shape_cast %102 : vector<1x2x384xf32> to vector<2x384xf32>
    %104 = vector.extract_strided_slice %103 {offsets = [0, 0], sizes = [2, 128], strides = [1, 1]} : vector<2x384xf32> to vector<2x128xf32>
    %105 = vector.extract_strided_slice %101 {offsets = [0, 0], sizes = [2, 128], strides = [1, 1]} : vector<2x384xf32> to vector<2x128xf32>
    %106 = arith.addf %104, %105 : vector<2x128xf32>
    %107 = arith.negf %106 : vector<2x128xf32>
    %108 = math.exp %107 : vector<2x128xf32>
    %cst_32 = arith.constant 1.000000e+00 : f32
    %109 = vector.broadcast %cst_32 : f32 to vector<2x128xf32>
    %110 = arith.addf %109, %108 : vector<2x128xf32>
    %111 = arith.divf %109, %110 : vector<2x128xf32>
    %112 = vector.extract_strided_slice %103 {offsets = [0, 128], sizes = [2, 128], strides = [1, 1]} : vector<2x384xf32> to vector<2x128xf32>
    %113 = vector.extract_strided_slice %101 {offsets = [0, 128], sizes = [2, 128], strides = [1, 1]} : vector<2x384xf32> to vector<2x128xf32>
    %114 = arith.addf %112, %113 : vector<2x128xf32>
    %115 = arith.negf %114 : vector<2x128xf32>
    %116 = math.exp %115 : vector<2x128xf32>
    %cst_33 = arith.constant 1.000000e+00 : f32
    %117 = vector.broadcast %cst_33 : f32 to vector<2x128xf32>
    %118 = arith.addf %117, %116 : vector<2x128xf32>
    %119 = arith.divf %117, %118 : vector<2x128xf32>
    %120 = vector.extract_strided_slice %103 {offsets = [0, 256], sizes = [2, 128], strides = [1, 1]} : vector<2x384xf32> to vector<2x128xf32>
    %121 = vector.extract_strided_slice %101 {offsets = [0, 256], sizes = [2, 128], strides = [1, 1]} : vector<2x384xf32> to vector<2x128xf32>
    %122 = arith.addf %121, %6 : vector<2x128xf32>
    %123 = arith.mulf %111, %122 : vector<2x128xf32>
    %124 = arith.addf %120, %123 : vector<2x128xf32>
    %125 = math.tanh %124 : vector<2x128xf32>
    %cst_34 = arith.constant 1.000000e+00 : f32
    %126 = vector.broadcast %cst_34 : f32 to vector<2x128xf32>
    %127 = arith.subf %126, %119 : vector<2x128xf32>
    %128 = arith.mulf %127, %125 : vector<2x128xf32>
    %129 = arith.mulf %119, %99 : vector<2x128xf32>
    %130 = arith.addf %128, %129 : vector<2x128xf32>
    %c6 = arith.constant 6 : index
    %c0_35 = arith.constant 0 : index
    %131 = vector.load %arg9[%c6, %c0_35] : memref<16x128xf32, #tpu.memory_space<vmem>>, vector<2x128xf32>
    tpu.vector_store %arg9[%c6, %c0_35], %130 {strides = array<i32>} : memref<16x128xf32, #tpu.memory_space<vmem>>, vector<2x128xf32>,
    %cst_36 = arith.constant dense<0.000000e+00> : vector<2x384xf32>
    %132 = tpu.matmul %130, %3, %cst_36 {dimension_numbers = #tpu.dot_dimension_numbers<[1], [0], [0], [1], [0, 0, 1, 1], [], []>} : vector<2x128xf32>, vector<128x384xf32>, vector<2x384xf32> -> vector<2x384xf32>
    %c4_37 = arith.constant 4 : index
    %c0_38 = arith.constant 0 : index
    %c0_39 = arith.constant 0 : index
    %133 = vector.load %arg2[%c4_37, %c0_38, %c0_39] : memref<8x2x384xf32, #tpu.memory_space<vmem>>, vector<1x2x384xf32>
    %134 = vector.shape_cast %133 : vector<1x2x384xf32> to vector<2x384xf32>
    %135 = vector.extract_strided_slice %134 {offsets = [0, 0], sizes = [2, 128], strides = [1, 1]} : vector<2x384xf32> to vector<2x128xf32>
    %136 = vector.extract_strided_slice %132 {offsets = [0, 0], sizes = [2, 128], strides = [1, 1]} : vector<2x384xf32> to vector<2x128xf32>
    %137 = arith.addf %135, %136 : vector<2x128xf32>
    %138 = arith.negf %137 : vector<2x128xf32>
    %139 = math.exp %138 : vector<2x128xf32>
    %cst_40 = arith.constant 1.000000e+00 : f32
    %140 = vector.broadcast %cst_40 : f32 to vector<2x128xf32>
    %141 = arith.addf %140, %139 : vector<2x128xf32>
    %142 = arith.divf %140, %141 : vector<2x128xf32>
    %143 = vector.extract_strided_slice %134 {offsets = [0, 128], sizes = [2, 128], strides = [1, 1]} : vector<2x384xf32> to vector<2x128xf32>
    %144 = vector.extract_strided_slice %132 {offsets = [0, 128], sizes = [2, 128], strides = [1, 1]} : vector<2x384xf32> to vector<2x128xf32>
    %145 = arith.addf %143, %144 : vector<2x128xf32>
    %146 = arith.negf %145 : vector<2x128xf32>
    %147 = math.exp %146 : vector<2x128xf32>
    %cst_41 = arith.constant 1.000000e+00 : f32
    %148 = vector.broadcast %cst_41 : f32 to vector<2x128xf32>
    %149 = arith.addf %148, %147 : vector<2x128xf32>
    %150 = arith.divf %148, %149 : vector<2x128xf32>
    %151 = vector.extract_strided_slice %134 {offsets = [0, 256], sizes = [2, 128], strides = [1, 1]} : vector<2x384xf32> to vector<2x128xf32>
    %152 = vector.extract_strided_slice %132 {offsets = [0, 256], sizes = [2, 128], strides = [1, 1]} : vector<2x384xf32> to vector<2x128xf32>
    %153 = arith.addf %152, %6 : vector<2x128xf32>
    %154 = arith.mulf %142, %153 : vector<2x128xf32>
    %155 = arith.addf %151, %154 : vector<2x128xf32>
    %156 = math.tanh %155 : vector<2x128xf32>
    %cst_42 = arith.constant 1.000000e+00 : f32
    %157 = vector.broadcast %cst_42 : f32 to vector<2x128xf32>
    %158 = arith.subf %157, %150 : vector<2x128xf32>
    %159 = arith.mulf %158, %156 : vector<2x128xf32>
    %160 = arith.mulf %150, %130 : vector<2x128xf32>
    %161 = arith.addf %159, %160 : vector<2x128xf32>
    %c8 = arith.constant 8 : index
    %c0_43 = arith.constant 0 : index
    %162 = vector.load %arg9[%c8, %c0_43] : memref<16x128xf32, #tpu.memory_space<vmem>>, vector<2x128xf32>
    tpu.vector_store %arg9[%c8, %c0_43], %161 {strides = array<i32>} : memref<16x128xf32, #tpu.memory_space<vmem>>, vector<2x128xf32>,
    %cst_44 = arith.constant dense<0.000000e+00> : vector<2x384xf32>
    %163 = tpu.matmul %161, %3, %cst_44 {dimension_numbers = #tpu.dot_dimension_numbers<[1], [0], [0], [1], [0, 0, 1, 1], [], []>} : vector<2x128xf32>, vector<128x384xf32>, vector<2x384xf32> -> vector<2x384xf32>
    %c5 = arith.constant 5 : index
    %c0_45 = arith.constant 0 : index
    %c0_46 = arith.constant 0 : index
    %164 = vector.load %arg2[%c5, %c0_45, %c0_46] : memref<8x2x384xf32, #tpu.memory_space<vmem>>, vector<1x2x384xf32>
    %165 = vector.shape_cast %164 : vector<1x2x384xf32> to vector<2x384xf32>
    %166 = vector.extract_strided_slice %165 {offsets = [0, 0], sizes = [2, 128], strides = [1, 1]} : vector<2x384xf32> to vector<2x128xf32>
    %167 = vector.extract_strided_slice %163 {offsets = [0, 0], sizes = [2, 128], strides = [1, 1]} : vector<2x384xf32> to vector<2x128xf32>
    %168 = arith.addf %166, %167 : vector<2x128xf32>
    %169 = arith.negf %168 : vector<2x128xf32>
    %170 = math.exp %169 : vector<2x128xf32>
    %cst_47 = arith.constant 1.000000e+00 : f32
    %171 = vector.broadcast %cst_47 : f32 to vector<2x128xf32>
    %172 = arith.addf %171, %170 : vector<2x128xf32>
    %173 = arith.divf %171, %172 : vector<2x128xf32>
    %174 = vector.extract_strided_slice %165 {offsets = [0, 128], sizes = [2, 128], strides = [1, 1]} : vector<2x384xf32> to vector<2x128xf32>
    %175 = vector.extract_strided_slice %163 {offsets = [0, 128], sizes = [2, 128], strides = [1, 1]} : vector<2x384xf32> to vector<2x128xf32>
    %176 = arith.addf %174, %175 : vector<2x128xf32>
    %177 = arith.negf %176 : vector<2x128xf32>
    %178 = math.exp %177 : vector<2x128xf32>
    %cst_48 = arith.constant 1.000000e+00 : f32
    %179 = vector.broadcast %cst_48 : f32 to vector<2x128xf32>
    %180 = arith.addf %179, %178 : vector<2x128xf32>
    %181 = arith.divf %179, %180 : vector<2x128xf32>
    %182 = vector.extract_strided_slice %165 {offsets = [0, 256], sizes = [2, 128], strides = [1, 1]} : vector<2x384xf32> to vector<2x128xf32>
    %183 = vector.extract_strided_slice %163 {offsets = [0, 256], sizes = [2, 128], strides = [1, 1]} : vector<2x384xf32> to vector<2x128xf32>
    %184 = arith.addf %183, %6 : vector<2x128xf32>
    %185 = arith.mulf %173, %184 : vector<2x128xf32>
    %186 = arith.addf %182, %185 : vector<2x128xf32>
    %187 = math.tanh %186 : vector<2x128xf32>
    %cst_49 = arith.constant 1.000000e+00 : f32
    %188 = vector.broadcast %cst_49 : f32 to vector<2x128xf32>
    %189 = arith.subf %188, %181 : vector<2x128xf32>
    %190 = arith.mulf %189, %187 : vector<2x128xf32>
    %191 = arith.mulf %181, %161 : vector<2x128xf32>
    %192 = arith.addf %190, %191 : vector<2x128xf32>
    %c10 = arith.constant 10 : index
    %c0_50 = arith.constant 0 : index
    %193 = vector.load %arg9[%c10, %c0_50] : memref<16x128xf32, #tpu.memory_space<vmem>>, vector<2x128xf32>
    tpu.vector_store %arg9[%c10, %c0_50], %192 {strides = array<i32>} : memref<16x128xf32, #tpu.memory_space<vmem>>, vector<2x128xf32>,
    %cst_51 = arith.constant dense<0.000000e+00> : vector<2x384xf32>
    %194 = tpu.matmul %192, %3, %cst_51 {dimension_numbers = #tpu.dot_dimension_numbers<[1], [0], [0], [1], [0, 0, 1, 1], [], []>} : vector<2x128xf32>, vector<128x384xf32>, vector<2x384xf32> -> vector<2x384xf32>
    %c6_52 = arith.constant 6 : index
    %c0_53 = arith.constant 0 : index
    %c0_54 = arith.constant 0 : index
    %195 = vector.load %arg2[%c6_52, %c0_53, %c0_54] : memref<8x2x384xf32, #tpu.memory_space<vmem>>, vector<1x2x384xf32>
    %196 = vector.shape_cast %195 : vector<1x2x384xf32> to vector<2x384xf32>
    %197 = vector.extract_strided_slice %196 {offsets = [0, 0], sizes = [2, 128], strides = [1, 1]} : vector<2x384xf32> to vector<2x128xf32>
    %198 = vector.extract_strided_slice %194 {offsets = [0, 0], sizes = [2, 128], strides = [1, 1]} : vector<2x384xf32> to vector<2x128xf32>
    %199 = arith.addf %197, %198 : vector<2x128xf32>
    %200 = arith.negf %199 : vector<2x128xf32>
    %201 = math.exp %200 : vector<2x128xf32>
    %cst_55 = arith.constant 1.000000e+00 : f32
    %202 = vector.broadcast %cst_55 : f32 to vector<2x128xf32>
    %203 = arith.addf %202, %201 : vector<2x128xf32>
    %204 = arith.divf %202, %203 : vector<2x128xf32>
    %205 = vector.extract_strided_slice %196 {offsets = [0, 128], sizes = [2, 128], strides = [1, 1]} : vector<2x384xf32> to vector<2x128xf32>
    %206 = vector.extract_strided_slice %194 {offsets = [0, 128], sizes = [2, 128], strides = [1, 1]} : vector<2x384xf32> to vector<2x128xf32>
    %207 = arith.addf %205, %206 : vector<2x128xf32>
    %208 = arith.negf %207 : vector<2x128xf32>
    %209 = math.exp %208 : vector<2x128xf32>
    %cst_56 = arith.constant 1.000000e+00 : f32
    %210 = vector.broadcast %cst_56 : f32 to vector<2x128xf32>
    %211 = arith.addf %210, %209 : vector<2x128xf32>
    %212 = arith.divf %210, %211 : vector<2x128xf32>
    %213 = vector.extract_strided_slice %196 {offsets = [0, 256], sizes = [2, 128], strides = [1, 1]} : vector<2x384xf32> to vector<2x128xf32>
    %214 = vector.extract_strided_slice %194 {offsets = [0, 256], sizes = [2, 128], strides = [1, 1]} : vector<2x384xf32> to vector<2x128xf32>
    %215 = arith.addf %214, %6 : vector<2x128xf32>
    %216 = arith.mulf %204, %215 : vector<2x128xf32>
    %217 = arith.addf %213, %216 : vector<2x128xf32>
    %218 = math.tanh %217 : vector<2x128xf32>
    %cst_57 = arith.constant 1.000000e+00 : f32
    %219 = vector.broadcast %cst_57 : f32 to vector<2x128xf32>
    %220 = arith.subf %219, %212 : vector<2x128xf32>
    %221 = arith.mulf %220, %218 : vector<2x128xf32>
    %222 = arith.mulf %212, %192 : vector<2x128xf32>
    %223 = arith.addf %221, %222 : vector<2x128xf32>
    %c12 = arith.constant 12 : index
    %c0_58 = arith.constant 0 : index
    %224 = vector.load %arg9[%c12, %c0_58] : memref<16x128xf32, #tpu.memory_space<vmem>>, vector<2x128xf32>
    tpu.vector_store %arg9[%c12, %c0_58], %223 {strides = array<i32>} : memref<16x128xf32, #tpu.memory_space<vmem>>, vector<2x128xf32>,
    %cst_59 = arith.constant dense<0.000000e+00> : vector<2x384xf32>
    %225 = tpu.matmul %223, %3, %cst_59 {dimension_numbers = #tpu.dot_dimension_numbers<[1], [0], [0], [1], [0, 0, 1, 1], [], []>} : vector<2x128xf32>, vector<128x384xf32>, vector<2x384xf32> -> vector<2x384xf32>
    %c7 = arith.constant 7 : index
    %c0_60 = arith.constant 0 : index
    %c0_61 = arith.constant 0 : index
    %226 = vector.load %arg2[%c7, %c0_60, %c0_61] : memref<8x2x384xf32, #tpu.memory_space<vmem>>, vector<1x2x384xf32>
    %227 = vector.shape_cast %226 : vector<1x2x384xf32> to vector<2x384xf32>
    %228 = vector.extract_strided_slice %227 {offsets = [0, 0], sizes = [2, 128], strides = [1, 1]} : vector<2x384xf32> to vector<2x128xf32>
    %229 = vector.extract_strided_slice %225 {offsets = [0, 0], sizes = [2, 128], strides = [1, 1]} : vector<2x384xf32> to vector<2x128xf32>
    %230 = arith.addf %228, %229 : vector<2x128xf32>
    %231 = arith.negf %230 : vector<2x128xf32>
    %232 = math.exp %231 : vector<2x128xf32>
    %cst_62 = arith.constant 1.000000e+00 : f32
    %233 = vector.broadcast %cst_62 : f32 to vector<2x128xf32>
    %234 = arith.addf %233, %232 : vector<2x128xf32>
    %235 = arith.divf %233, %234 : vector<2x128xf32>
    %236 = vector.extract_strided_slice %227 {offsets = [0, 128], sizes = [2, 128], strides = [1, 1]} : vector<2x384xf32> to vector<2x128xf32>
    %237 = vector.extract_strided_slice %225 {offsets = [0, 128], sizes = [2, 128], strides = [1, 1]} : vector<2x384xf32> to vector<2x128xf32>
    %238 = arith.addf %236, %237 : vector<2x128xf32>
    %239 = arith.negf %238 : vector<2x128xf32>
    %240 = math.exp %239 : vector<2x128xf32>
    %cst_63 = arith.constant 1.000000e+00 : f32
    %241 = vector.broadcast %cst_63 : f32 to vector<2x128xf32>
    %242 = arith.addf %241, %240 : vector<2x128xf32>
    %243 = arith.divf %241, %242 : vector<2x128xf32>
    %244 = vector.extract_strided_slice %227 {offsets = [0, 256], sizes = [2, 128], strides = [1, 1]} : vector<2x384xf32> to vector<2x128xf32>
    %245 = vector.extract_strided_slice %225 {offsets = [0, 256], sizes = [2, 128], strides = [1, 1]} : vector<2x384xf32> to vector<2x128xf32>
    %246 = arith.addf %245, %6 : vector<2x128xf32>
    %247 = arith.mulf %235, %246 : vector<2x128xf32>
    %248 = arith.addf %244, %247 : vector<2x128xf32>
    %249 = math.tanh %248 : vector<2x128xf32>
    %cst_64 = arith.constant 1.000000e+00 : f32
    %250 = vector.broadcast %cst_64 : f32 to vector<2x128xf32>
    %251 = arith.subf %250, %243 : vector<2x128xf32>
    %252 = arith.mulf %251, %249 : vector<2x128xf32>
    %253 = arith.mulf %243, %223 : vector<2x128xf32>
    %254 = arith.addf %252, %253 : vector<2x128xf32>
    %c14 = arith.constant 14 : index
    %c0_65 = arith.constant 0 : index
    %255 = vector.load %arg9[%c14, %c0_65] : memref<16x128xf32, #tpu.memory_space<vmem>>, vector<2x128xf32>
    tpu.vector_store %arg9[%c14, %c0_65], %254 {strides = array<i32>} : memref<16x128xf32, #tpu.memory_space<vmem>>, vector<2x128xf32>,
    %c0_66 = arith.constant 0 : index
    %c0_67 = arith.constant 0 : index
    %256 = vector.load %arg8[%c0_66, %c0_67] : memref<2x128xf32, #tpu.memory_space<vmem>>, vector<2x128xf32>
    tpu.vector_store %arg8[%c0_66, %c0_67], %254 {strides = array<i32>} : memref<2x128xf32, #tpu.memory_space<vmem>>, vector<2x128xf32>,
    %c0_68 = arith.constant 0 : index
    %c0_69 = arith.constant 0 : index
    %257 = vector.load %arg5[%c0_68, %c0_69] : memref<128x128xf32, #tpu.memory_space<vmem>>, vector<128x128xf32>
    %c0_70 = arith.constant 0 : index
    %c0_71 = arith.constant 0 : index
    %258 = vector.load %arg9[%c0_70, %c0_71] : memref<16x128xf32, #tpu.memory_space<vmem>>, vector<16x128xf32>
    %cst_72 = arith.constant dense<0.000000e+00> : vector<16x128xf32>
    %259 = tpu.matmul %258, %257, %cst_72 {dimension_numbers = #tpu.dot_dimension_numbers<[1], [0], [0], [1], [0, 0, 1, 1], [], []>} : vector<16x128xf32>, vector<128x128xf32>, vector<16x128xf32> -> vector<16x128xf32>
    %c0_73 = arith.constant 0 : index
    %c0_74 = arith.constant 0 : index
    %260 = vector.load %arg6[%c0_73, %c0_74] : memref<1x128xf32, #tpu.memory_space<vmem>>, vector<1x128xf32>
    %261 = vector.broadcast %260 : vector<1x128xf32> to vector<16x128xf32>
    %262 = arith.addf %259, %261 : vector<16x128xf32>
    %263 = math.tanh %262 : vector<16x128xf32>
    %c0_75 = arith.constant 0 : index
    %c0_76 = arith.constant 0 : index
    %c0_77 = arith.constant 0 : index
    %264 = vector.load %arg7[%c0_75, %c0_76, %c0_77] : memref<1x16x128xf32, #tpu.memory_space<vmem>>, vector<1x16x128xf32>
    %265 = vector.shape_cast %264 : vector<1x16x128xf32> to vector<16x128xf32>
    %266 = vector.shape_cast %263 : vector<16x128xf32> to vector<1x16x128xf32>
    tpu.vector_store %arg7[%c0_75, %c0_76, %c0_77], %266 {strides = array<i32>} : memref<1x16x128xf32, #tpu.memory_space<vmem>>, vector<1x16x128xf32>,
    return
  }
  func.func @transform_0(%arg0: i32, %arg1: i32) -> (i32, i32, i32) {
    %c0_i32 = arith.constant 0 : i32
    %c0_i32_0 = arith.constant 0 : i32
    return %arg1, %arg0, %c0_i32 : i32, i32, i32
  }
  func.func @transform_1(%arg0: i32, %arg1: i32) -> (i32, i32) {
    %c0_i32 = arith.constant 0 : i32
    %c0_i32_0 = arith.constant 0 : i32
    %c0_i32_1 = arith.constant 0 : i32
    return %c0_i32, %c0_i32_0 : i32, i32
  }
  func.func @transform_2(%arg0: i32, %arg1: i32) -> (i32, i32) {
    %c0_i32 = arith.constant 0 : i32
    %c0_i32_0 = arith.constant 0 : i32
    %c0_i32_1 = arith.constant 0 : i32
    return %c0_i32, %c0_i32_0 : i32, i32
  }
  func.func @transform_3(%arg0: i32, %arg1: i32) -> (i32, i32) {
    %c0_i32 = arith.constant 0 : i32
    %c0_i32_0 = arith.constant 0 : i32
    %c0_i32_1 = arith.constant 0 : i32
    return %c0_i32, %c0_i32_0 : i32, i32
  }
  func.func @transform_4(%arg0: i32, %arg1: i32) -> (i32, i32) {
    %c0_i32 = arith.constant 0 : i32
    %c0_i32_0 = arith.constant 0 : i32
    %c0_i32_1 = arith.constant 0 : i32
    return %c0_i32, %c0_i32_0 : i32, i32
  }
  func.func @transform_5(%arg0: i32, %arg1: i32) -> (i32, i32, i32) {
    %c0_i32 = arith.constant 0 : i32
    %c0_i32_0 = arith.constant 0 : i32
    return %arg0, %arg1, %c0_i32 : i32, i32, i32
  }
}

</mosaic_0001>

<bundles_post_ra>
// kernel: _lambda_.1
= control target key start
LH: loop header
LB: loop body
LE: loop exit
PB: predicated region body
PF: predicated region fallthrough
CT: control target
= control target key end

     0   :  { %v2618_v3 = vmov 0.0|0.0   ;;  %v2619_v4 = vmov 0.0   ;;  %vm2620_vm0 = vmmov 0   ;;  %s3265_s1 = inlined_call_operand.vmem [shape: f32[128,384], index: 1, kind: input, shape index: {}]   ;;  %s3266_s0 = inlined_call_operand.vmem [shape: f32[8,2,384], index: 0, kind: input, shape index: {}]   ;;  %s3267_s2 = inlined_call_operand.vmem [shape: f32[1,128], index: 2, kind: input, shape index: {}]   ;;  %s3268_s3 = inlined_call_operand.vmem [shape: f32[128,128], index: 3, kind: input, shape index: {}]   ;;  %s3269_s4 = inlined_call_operand.vmem [shape: f32[1,128], index: 4, kind: input, shape index: {}]   ;;  %s3270_s5 = inlined_call_operand.vmem [shape: f32[1,16,128], index: 5, kind: output, shape index: {}]  }
   0x1   :  { %v26_v0 = vld [vmem:[%s3265_s1 + $0x8] sm:$0xff]  ;;  %v29_v1 = vld [vmem:[%s3265_s1 + $0x20] sm:$0xff]  ;;  %2083 = vmatprep.subr.bf16.mxu1 %v2618_v3  ;;  %145 = vmatprep.mubr.f32.mxu0 %v2619_v4  ;;  %24 = vst [vmem:[#allocation2] sm:$0x3] %v2619_v4  ;;  %v28_v6 = vld [vmem:[%s3265_s1 + $0x18] sm:$0xff] }
   0x2   :  { %v25_v2 = vld [vmem:[%s3265_s1] sm:$0xff]  ;;  %v2663_v5 = vpack.c.bf16 %v29_v1, %v26_v0  ;;  %v32_v7 = vld [vmem:[%s3265_s1 + $0x38] sm:$0xff]  ;;  %v35_v8 = vld [vmem:[%s3265_s1 + $0x50] sm:$0xff]  ;;  %1768 = vmatprep.mubr.msk.f32.mxu1 %vm2620_vm0, %v2619_v4 }
   0x3   :  { %v2676_v9 = vpack.c.bf16 %v28_v6, %v25_v2  ;;  %v2678_v10 = vpack.c.bf16 %v35_v8, %v32_v7  ;;  %v31_v11 = vld [vmem:[%s3265_s1 + $0x30] sm:$0xff]  ;;  %v34_v12 = vld [vmem:[%s3265_s1 + $0x48] sm:$0xff]  ;;  %v41_v14 = vld [vmem:[%s3265_s1 + $0x80] sm:$0xff] }
   0x4   :  { %v38_v13 = vld [vmem:[%s3265_s1 + $0x68] sm:$0xff]  ;;  %2052 = vmatprep.subr.bf16.mxu0 %v2663_v5  ;;  %v2694_v15 = vpack.c.bf16 %v34_v12, %v31_v11  ;;  %v37_v17 = vld [vmem:[%s3265_s1 + $0x60] sm:$0xff]  ;;  %v40_v18 = vld [vmem:[%s3265_s1 + $0x78] sm:$0xff] }
   0x5   :  { %2054 = vmatpush1.bf16.msra.mxu0 %v2676_v9  ;;  %v2697_v16 = vpack.c.bf16 %v41_v14, %v38_v13  ;;  %v44_v19 = vld [vmem:[%s3265_s1 + $0x98] sm:$0xff]  ;;  %v47_v20 = vld [vmem:[%s3265_s1 + $0xb0] sm:$0xff]  ;;  %v2712_v21 = vpack.c.bf16 %v40_v18, %v37_v17  ;;  %v46_v24 = vld [vmem:[%s3265_s1 + $0xa8] sm:$0xff] }
   0x6   :  { %2056 = vmatprep.subr.bf16.mxu0 %v2678_v10  ;;  %v43_v22 = vld [vmem:[%s3265_s1 + $0x90] sm:$0xff]  ;;  %v2718_v23 = vpack.c.bf16 %v47_v20, %v44_v19  ;;  %v30_v26 = vld [vmem:[%s3265_s1 + $0x28] sm:$0xff]  ;;  %v53_v28 = vld [vmem:[%s3265_s1 + $0xe0] sm:$0xff] }
   0x7   :  { %v27_v25 = vld [vmem:[%s3265_s1 + $0x10] sm:$0xff]  ;;  %v50_v27 = vld [vmem:[%s3265_s1 + $0xc8] sm:$0xff]  ;;  %v33_v30 = vld [vmem:[%s3265_s1 + $0x40] sm:$0xff]  ;;  %v2744_v32 = vpack.c.bf16 %v46_v24, %v43_v22 }
   0x8   :  { %v2735_v29 = vpack.c.bf16 %v30_v26, %v27_v25  ;;  %v36_v31 = vld [vmem:[%s3265_s1 + $0x58] sm:$0xff]  ;;  %v49_v33 = vld [vmem:[%s3265_s1 + $0xc0] sm:$0xff]  ;;  %v2753_v35 = vpack.c.bf16 %v53_v28, %v50_v27  ;;  %v39_v37 = vld [vmem:[%s3265_s1 + $0x70] sm:$0xff] }
   0x9   :  { %2058 = vmatpush1.bf16.msra.mxu0 %v2694_v15  ;;  %v2750_v34 = vpack.c.bf16 %v36_v31, %v33_v30  ;;  %v52_v36 = vld [vmem:[%s3265_s1 + $0xd8] sm:$0xff]  ;;  %v42_v38 = vld [vmem:[%s3265_s1 + $0x88] sm:$0xff]  ;;  %v59_v40 = vld [vmem:[%s3265_s1 + $0x110] sm:$0xff] }
   0xa   :  { %2060 = vmatprep.subr.bf16.mxu0 %v2697_v16  ;;  %2085 = vmatpush3.bf16.msra.mxu1 %v2735_v29  ;;  %v56_v39 = vld [vmem:[%s3265_s1 + $0xf8] sm:$0xff]  ;;  %v2772_v41 = vpack.c.bf16 %v52_v36, %v49_v33  ;;  %v55_v42 = vld [vmem:[%s3265_s1 + $0xf0] sm:$0xff]  ;;  %v2778_v43 = vpack.c.bf16 %v42_v38, %v39_v37  ;;  %v58_v45 = vld [vmem:[%s3265_s1 + $0x108] sm:$0xff] }
   0xb   :  { %2086 = vmatprep.subr.bf16.mxu1 %v2618_v3  ;;  %v2781_v44 = vpack.c.bf16 %v59_v40, %v56_v39  ;;  %v45_v46 = vld [vmem:[%s3265_s1 + $0xa0] sm:$0xff]  ;;  %v48_v47 = vld [vmem:[%s3265_s1 + $0xb8] sm:$0xff]  ;;  %v62_v48 = vld [vmem:[%s3265_s1 + $0x128] sm:$0xff]  ;;  %v2800_v50 = vpack.c.bf16 %v58_v45, %v55_v42 }
   0xc   :  { %v65_v49 = vld [vmem:[%s3265_s1 + $0x140] sm:$0xff]  ;;  %v2806_v52 = vpack.c.bf16 %v48_v47, %v45_v46  ;;  %v64_v54 = vld [vmem:[%s3265_s1 + $0x138] sm:$0xff]  ;;  %v51_v55 = vld [vmem:[%s3265_s1 + $0xd0] sm:$0xff] }
   0xd   :  { %2062 = vmatpush1.bf16.msra.mxu0 %v2712_v21  ;;  %v61_v51 = vld [vmem:[%s3265_s1 + $0x120] sm:$0xff]  ;;  %v2809_v53 = vpack.c.bf16 %v65_v49, %v62_v48  ;;  %v54_v56 = vld [vmem:[%s3265_s1 + $0xe8] sm:$0xff]  ;;  %v68_v57 = vld [vmem:[%s3265_s1 + $0x158] sm:$0xff] }
   0xe   :  { %2064 = vmatprep.subr.bf16.mxu0 %v2718_v23  ;;  %2088 = vmatpush3.bf16.msra.mxu1 %v2750_v34  ;;  %v71_v58 = vld [vmem:[%s3265_s1 + $0x170] sm:$0xff]  ;;  %v2828_v59 = vpack.c.bf16 %v64_v54, %v61_v51  ;;  %v2834_v61 = vpack.c.bf16 %v54_v56, %v51_v55  ;;  %v70_v63 = vld [vmem:[%s3265_s1 + $0x168] sm:$0xff]  ;;  %v57_v0 = vld [vmem:[%s3265_s1 + $0x100] sm:$0xff] }
   0xf   :  { %2089 = vmatprep.subr.bf16.mxu1 %v2618_v3  ;;  %v67_v60 = vld [vmem:[%s3265_s1 + $0x150] sm:$0xff]  ;;  %v2837_v62 = vpack.c.bf16 %v71_v58, %v68_v57  ;;  %v60_v1 = vld [vmem:[%s3265_s1 + $0x118] sm:$0xff]  ;;  %v66_v8 = vld [vmem:[%s3265_s1 + $0x148] sm:$0xff] }
  0x10   :  { %v2850_v2 = vpack.c.bf16 %v70_v63, %v67_v60  ;;  %v2853_v6 = vpack.c.bf16 %v60_v1, %v57_v0  ;;  %v63_v7 = vld [vmem:[%s3265_s1 + $0x130] sm:$0xff]  ;;  %v2864_v11 = vld [vmem:[#allocation2] sm:$0x3]  ;;  %v72_v14 = vld [vmem:[%s3265_s1 + $0x178] sm:$0xff] }
  0x11   :  { %2066 = vmatpush1.bf16.msra.mxu0 %v2744_v32  ;;  %v2867_v12 = vpack.c.bf16 %v66_v8, %v63_v7  ;;  %v69_v13 = vld [vmem:[%s3265_s1 + $0x160] sm:$0xff] }
  0x12   :  { %2068 = vmatprep.subr.bf16.mxu0 %v2753_v35  ;;  %2091 = vmatpush3.bf16.msra.mxu1 %v2778_v43  ;;  %v2879_v17 = vpack.c.bf16 %v72_v14, %v69_v13  ;;  %v222_v18 = vld [vmem:[%s3266_s0] sm:$0x3f]  ;;  %v1560_v56 = vld [vmem:[%s3266_s0 + $0x6] sm:$0x3f] }
  0x13   :  { %2092 = vmatprep.subr.bf16.mxu1 %v2618_v3  ;;  %v231_v20 = vrot.slane %v222_v18, 2  ;;  %v2926_v37 = vld [vmem:[%s3267_s2] ss:$0 sm:$0xff]  ;;  %v242_v40 = vrot.slane %v222_v18, 4  ;;  %v402_v60 = vrot.slane %v1560_v56, 2 }
  0x15   :  { %2070 = vmatpush1.bf16.msra.mxu0 %v2772_v41 }
  0x16   :  { %2072 = vmatprep.subr.bf16.mxu0 %v2781_v44  ;;  %2094 = vmatpush3.bf16.msra.mxu1 %v2806_v52 }
  0x17   :  { %2095 = vmatprep.subr.bf16.mxu1 %v2618_v3 }
  0x19   :  { %2074 = vmatpush1.bf16.msra.mxu0 %v2800_v50 }
  0x1a   :  { %2076 = vmatprep.subr.bf16.mxu0 %v2809_v53  ;;  %2097 = vmatpush3.bf16.msra.mxu1 %v2834_v61 }
  0x1b   :  { %2098 = vmatprep.subr.bf16.mxu1 %v2618_v3 }
  0x1d   :  { %2078 = vmatpush1.bf16.msra.mxu0 %v2828_v59 }
  0x1e   :  { %2080 = vmatprep.subr.bf16.mxu0 %v2837_v62  ;;  %2100 = vmatpush3.bf16.msra.mxu1 %v2853_v6 }
  0x1f   :  { %2101 = vmatprep.subr.bf16.mxu1 %v2618_v3 }
  0x21   :  { %2082 = vmatpush1.bf16.msra.mxu0 %v2850_v2 }
  0x22   :  { %2108 = vmatprep.subr.bf16.mxu0 %v2663_v5  ;;  %2103 = vmatpush3.bf16.msra.mxu1 %v2867_v12 }
  0x23   :  { %2104 = vmatprep.subr.bf16.mxu1 %v2618_v3 }
  0x24   :  { %146 = vmatmul.mubr.f32.vlgmr.msra.gmra.mrb[0].mxu0 %v2864_v11 }
  0x25   :  { %2110 = vmatpush1.bf16.msra.mxu0 %v2676_v9  ;;  %315 = vmatprep.mubr.f32.mxu0 %v2619_v4 }
  0x26   :  { %2112 = vmatprep.subr.bf16.mxu0 %v2678_v10  ;;  %2106 = vmatpush3.bf16.msra.mxu1 %v2879_v17 }
  0x27   :  { %2139 = vmatprep.subr.bf16.mxu1 %v2618_v3 }
  0x29   :  { %2114 = vmatpush1.bf16.msra.mxu0 %v2694_v15  ;;  %1769 = vmatmul.mubr.f32.vlgmr.msra.gmra.mrb[0].mxu1 %v2864_v11 }
  0x2a   :  { %2116 = vmatprep.subr.bf16.mxu0 %v2697_v16  ;;  %2141 = vmatpush3.bf16.msra.mxu1 %v2735_v29 }
  0x2b   :  { %2142 = vmatprep.subr.bf16.mxu1 %v2618_v3  ;;  %1803 = vmatprep.mubr.msk.f32.mxu1 %vm2620_vm0, %v2619_v4 }
  0x2d   :  { %2118 = vmatpush1.bf16.msra.mxu0 %v2712_v21 }
  0x2e   :  { %2120 = vmatprep.subr.bf16.mxu0 %v2718_v23  ;;  %2144 = vmatpush3.bf16.msra.mxu1 %v2750_v34 }
  0x2f   :  { %2145 = vmatprep.subr.bf16.mxu1 %v2618_v3 }
  0x31   :  { %2122 = vmatpush1.bf16.msra.mxu0 %v2744_v32 }
  0x32   :  { %2124 = vmatprep.subr.bf16.mxu0 %v2753_v35  ;;  %2147 = vmatpush3.bf16.msra.mxu1 %v2778_v43 }
  0x33   :  { %2148 = vmatprep.subr.bf16.mxu1 %v2618_v3 }
  0x35   :  { %2126 = vmatpush1.bf16.msra.mxu0 %v2772_v41 }
  0x36   :  { %2128 = vmatprep.subr.bf16.mxu0 %v2781_v44  ;;  %2150 = vmatpush3.bf16.msra.mxu1 %v2806_v52 }
  0x37   :  { %2151 = vmatprep.subr.bf16.mxu1 %v2618_v3 }
  0x39   :  { %2130 = vmatpush1.bf16.msra.mxu0 %v2800_v50 }
  0x3a   :  { %2132 = vmatprep.subr.bf16.mxu0 %v2809_v53  ;;  %2153 = vmatpush3.bf16.msra.mxu1 %v2834_v61 }
  0x3b   :  { %2154 = vmatprep.subr.bf16.mxu1 %v2618_v3 }
  0x3d   :  { %2134 = vmatpush1.bf16.msra.mxu0 %v2828_v59 }
  0x3e   :  { %2136 = vmatprep.subr.bf16.mxu0 %v2837_v62  ;;  %2156 = vmatpush3.bf16.msra.mxu1 %v2853_v6 }
  0x3f   :  { %2157 = vmatprep.subr.bf16.mxu1 %v2618_v3 }
  0x41   :  { %2138 = vmatpush1.bf16.msra.mxu0 %v2850_v2 }
  0x42   :  { %2164 = vmatprep.subr.bf16.mxu0 %v2663_v5  ;;  %2159 = vmatpush3.bf16.msra.mxu1 %v2867_v12 }
  0x43   :  { %2160 = vmatprep.subr.bf16.mxu1 %v2618_v3 }
  0x46   :  { %2162 = vmatpush3.bf16.msra.mxu1 %v2879_v17 }
  0x47   :  { %2195 = vmatprep.subr.bf16.mxu1 %v2618_v3 }
  0xf7   :  { %v147_v19 = vpop.f32.mrb[0].mxu0 }
  0xf8   :  { %v223_v22 = vadd.f32 %v222_v18, %v147_v19  ;;  %v149_v24 = vpop.f32.mrb[1].mxu0 }
  0xf9   :  { %v233_v26 = vadd.f32 %v231_v20, %v149_v24  ;;  %v413_v20 = vrot.slane %v1560_v56, 4 }
  0xfa   :  { %v1558_v25 = vmul.f32 -1.442695, %v223_v22 }
  0xfb   :  { %v1559_v27 = vmul.f32 -1.442695, %v233_v26 }
  0xfc   :  { %2534 = vpow2.f32 %v1558_v25  ;;  %v218_v28 = vpop.f32.mrb[0].mxu1 }
  0xfd   :  { %v1770_v30 = vpop.f32.mrb[1].mxu1  ;;  %2536 = vpow2.f32 %v1559_v27  ;;  %v240_v39 = vadd.f32 %v2926_v37, %v218_v28 }
 0x106   :  { %v2535_v31 = vpop.eup %2534 }
 0x107   :  { %v227_v33 = vadd.f32 1.0, %v2535_v31  ;;  %v2537_v36 = vpop.eup %2536 }
 0x108   :  { %v237_v38 = vadd.f32 1.0, %v2537_v36 }
 0x109   :  { %2538 = vrcp.f32 %v227_v33 }
 0x10a   :  { %2540 = vrcp.f32 %v237_v38  ;;  %v1563_v38 = vld [vmem:[%s3266_s0 + $0xc] sm:$0x3f] }
 0x113   :  { %v2539_v42 = vpop.eup %2538 }
 0x114   :  { %v241_v45 = vmul.f32 %v2539_v42, %v240_v39  ;;  %v2541_v47 = vpop.eup %2540  ;;  %v573_v42 = vrot.slane %v1563_v38, 2 }
 0x115   :  { %v246_v48 = vsub.f32 1.0, %v2541_v47  ;;  %v248_v54 = vmul.f32 %v2541_v47, %v2864_v11 }
 0x116   :  { %v244_v46 = vadd.f32 %v242_v40, %v241_v45 }
 0x118   :  { %2542 = vtanh.f32 %v244_v46 }
 0x122   :  { %v2543_v49 = vpop.eup %2542 }
 0x123   :  { %v247_v51 = vmul.f32 %v2543_v49, %v246_v48 }
 0x125   :  { %v2930_v55 = vadd.f32 %v248_v54, %v247_v51 }
 0x127   :  { %250 = vst [vmem:[#allocation3] sm:$0x3] %v2930_v55  ;;  %316 = vmatmul.mubr.f32.vlgmr.msra.gmra.mrb[2].mxu0 %v2930_v55  ;;  %1804 = vmatmul.mubr.f32.vlgmr.msra.gmra.mrb[2].mxu1 %v2930_v55 }
 0x128   :  { %2166 = vmatpush1.bf16.msra.mxu0 %v2676_v9  ;;  %2197 = vmatpush3.bf16.msra.mxu1 %v2735_v29 }
 0x129   :  { %2168 = vmatprep.subr.bf16.mxu0 %v2678_v10  ;;  %2198 = vmatprep.subr.bf16.mxu1 %v2618_v3 }
 0x12a   :  { %486 = vmatprep.mubr.f32.mxu0 %v2619_v4  ;;  %1838 = vmatprep.mubr.msk.f32.mxu1 %vm2620_vm0, %v2619_v4 }
 0x12c   :  { %2170 = vmatpush1.bf16.msra.mxu0 %v2694_v15  ;;  %2200 = vmatpush3.bf16.msra.mxu1 %v2750_v34 }
 0x12d   :  { %2172 = vmatprep.subr.bf16.mxu0 %v2697_v16  ;;  %2201 = vmatprep.subr.bf16.mxu1 %v2618_v3 }
 0x130   :  { %2174 = vmatpush1.bf16.msra.mxu0 %v2712_v21  ;;  %2203 = vmatpush3.bf16.msra.mxu1 %v2778_v43 }
 0x131   :  { %2176 = vmatprep.subr.bf16.mxu0 %v2718_v23  ;;  %2204 = vmatprep.subr.bf16.mxu1 %v2618_v3 }
 0x134   :  { %2178 = vmatpush1.bf16.msra.mxu0 %v2744_v32  ;;  %2206 = vmatpush3.bf16.msra.mxu1 %v2806_v52 }
 0x135   :  { %2180 = vmatprep.subr.bf16.mxu0 %v2753_v35  ;;  %2207 = vmatprep.subr.bf16.mxu1 %v2618_v3 }
 0x138   :  { %2182 = vmatpush1.bf16.msra.mxu0 %v2772_v41  ;;  %2209 = vmatpush3.bf16.msra.mxu1 %v2834_v61 }
 0x139   :  { %2184 = vmatprep.subr.bf16.mxu0 %v2781_v44  ;;  %2210 = vmatprep.subr.bf16.mxu1 %v2618_v3 }
 0x13c   :  { %2186 = vmatpush1.bf16.msra.mxu0 %v2800_v50  ;;  %2212 = vmatpush3.bf16.msra.mxu1 %v2853_v6 }
 0x13d   :  { %2188 = vmatprep.subr.bf16.mxu0 %v2809_v53  ;;  %2213 = vmatprep.subr.bf16.mxu1 %v2618_v3 }
 0x140   :  { %2190 = vmatpush1.bf16.msra.mxu0 %v2828_v59  ;;  %2215 = vmatpush3.bf16.msra.mxu1 %v2867_v12 }
 0x141   :  { %2192 = vmatprep.subr.bf16.mxu0 %v2837_v62  ;;  %2216 = vmatprep.subr.bf16.mxu1 %v2618_v3 }
 0x144   :  { %2194 = vmatpush1.bf16.msra.mxu0 %v2850_v2  ;;  %2218 = vmatpush3.bf16.msra.mxu1 %v2879_v17 }
 0x145   :  { %2220 = vmatprep.subr.bf16.mxu0 %v2663_v5  ;;  %2251 = vmatprep.subr.bf16.mxu1 %v2618_v3 }
 0x1fa   :  { %v317_v57 = vpop.f32.mrb[2].mxu0  ;;  %v388_v58 = vpop.f32.mrb[2].mxu1 }
 0x1fb   :  { %v394_v63 = vadd.f32 %v1560_v56, %v317_v57  ;;  %v319_v0 = vpop.f32.mrb[3].mxu0  ;;  %v1805_v1 = vpop.f32.mrb[3].mxu1  ;;  %v411_v22 = vadd.f32 %v2926_v37, %v388_v58  ;;  %v584_v58 = vrot.slane %v1563_v38, 4 }
 0x1fc   :  { %v404_v8 = vadd.f32 %v402_v60, %v319_v0 }
 0x1fd   :  { %v1561_v7 = vmul.f32 -1.442695, %v394_v63 }
 0x1fe   :  { %v1562_v11 = vmul.f32 -1.442695, %v404_v8 }
 0x1ff   :  { %2544 = vpow2.f32 %v1561_v7 }
 0x200   :  { %2546 = vpow2.f32 %v1562_v11 }
 0x209   :  { %v2545_v13 = vpop.eup %2544 }
 0x20a   :  { %v398_v14 = vadd.f32 1.0, %v2545_v13  ;;  %v2547_v18 = vpop.eup %2546 }
 0x20b   :  { %v408_v19 = vadd.f32 1.0, %v2547_v18 }
 0x20c   :  { %2548 = vrcp.f32 %v398_v14 }
 0x20d   :  { %2550 = vrcp.f32 %v408_v19  ;;  %v1566_v19 = vld [vmem:[%s3266_s0 + $0x12] sm:$0x3f] }
 0x216   :  { %v2549_v24 = vpop.eup %2548 }
 0x217   :  { %v412_v25 = vmul.f32 %v2549_v24, %v411_v22  ;;  %v2551_v27 = vpop.eup %2550  ;;  %v744_v24 = vrot.slane %v1566_v19, 2 }
 0x218   :  { %v417_v28 = vsub.f32 1.0, %v2551_v27  ;;  %v419_v33 = vmul.f32 %v2551_v27, %v2930_v55 }
 0x219   :  { %v415_v26 = vadd.f32 %v413_v20, %v412_v25 }
 0x21b   :  { %2552 = vtanh.f32 %v415_v26 }
 0x225   :  { %v2553_v30 = vpop.eup %2552 }
 0x226   :  { %v418_v31 = vmul.f32 %v2553_v30, %v417_v28 }
 0x228   :  { %v2975_v36 = vadd.f32 %v419_v33, %v418_v31 }
 0x22a   :  { %421 = vst [vmem:[#allocation3 + $0x2] sm:$0x3] %v2975_v36  ;;  %487 = vmatmul.mubr.f32.vlgmr.msra.gmra.mrb[4].mxu0 %v2975_v36  ;;  %1839 = vmatmul.mubr.f32.vlgmr.msra.gmra.mrb[4].mxu1 %v2975_v36 }
 0x22b   :  { %2222 = vmatpush1.bf16.msra.mxu0 %v2676_v9  ;;  %2253 = vmatpush3.bf16.msra.mxu1 %v2735_v29 }
 0x22c   :  { %2224 = vmatprep.subr.bf16.mxu0 %v2678_v10  ;;  %2254 = vmatprep.subr.bf16.mxu1 %v2618_v3 }
 0x22d   :  { %657 = vmatprep.mubr.f32.mxu0 %v2619_v4  ;;  %1873 = vmatprep.mubr.msk.f32.mxu1 %vm2620_vm0, %v2619_v4 }
 0x22f   :  { %2226 = vmatpush1.bf16.msra.mxu0 %v2694_v15  ;;  %2256 = vmatpush3.bf16.msra.mxu1 %v2750_v34 }
 0x230   :  { %2228 = vmatprep.subr.bf16.mxu0 %v2697_v16  ;;  %2257 = vmatprep.subr.bf16.mxu1 %v2618_v3 }
 0x233   :  { %2230 = vmatpush1.bf16.msra.mxu0 %v2712_v21  ;;  %2259 = vmatpush3.bf16.msra.mxu1 %v2778_v43 }
 0x234   :  { %2232 = vmatprep.subr.bf16.mxu0 %v2718_v23  ;;  %2260 = vmatprep.subr.bf16.mxu1 %v2618_v3 }
 0x237   :  { %2234 = vmatpush1.bf16.msra.mxu0 %v2744_v32  ;;  %2262 = vmatpush3.bf16.msra.mxu1 %v2806_v52 }
 0x238   :  { %2236 = vmatprep.subr.bf16.mxu0 %v2753_v35  ;;  %2263 = vmatprep.subr.bf16.mxu1 %v2618_v3 }
 0x23b   :  { %2238 = vmatpush1.bf16.msra.mxu0 %v2772_v41  ;;  %2265 = vmatpush3.bf16.msra.mxu1 %v2834_v61 }
 0x23c   :  { %2240 = vmatprep.subr.bf16.mxu0 %v2781_v44  ;;  %2266 = vmatprep.subr.bf16.mxu1 %v2618_v3 }
 0x23f   :  { %2242 = vmatpush1.bf16.msra.mxu0 %v2800_v50  ;;  %2268 = vmatpush3.bf16.msra.mxu1 %v2853_v6 }
 0x240   :  { %2244 = vmatprep.subr.bf16.mxu0 %v2809_v53  ;;  %2269 = vmatprep.subr.bf16.mxu1 %v2618_v3 }
 0x243   :  { %2246 = vmatpush1.bf16.msra.mxu0 %v2828_v59  ;;  %2271 = vmatpush3.bf16.msra.mxu1 %v2867_v12 }
 0x244   :  { %2248 = vmatprep.subr.bf16.mxu0 %v2837_v62  ;;  %2272 = vmatprep.subr.bf16.mxu1 %v2618_v3 }
 0x247   :  { %2250 = vmatpush1.bf16.msra.mxu0 %v2850_v2  ;;  %2274 = vmatpush3.bf16.msra.mxu1 %v2879_v17 }
 0x248   :  { %2276 = vmatprep.subr.bf16.mxu0 %v2663_v5  ;;  %2307 = vmatprep.subr.bf16.mxu1 %v2618_v3 }
 0x2fd   :  { %v488_v39 = vpop.f32.mrb[4].mxu0  ;;  %v559_v40 = vpop.f32.mrb[4].mxu1 }
 0x2fe   :  { %v565_v45 = vadd.f32 %v1563_v38, %v488_v39  ;;  %v490_v46 = vpop.f32.mrb[5].mxu0  ;;  %v1840_v47 = vpop.f32.mrb[5].mxu1  ;;  %v582_v60 = vadd.f32 %v2926_v37, %v559_v40  ;;  %v755_v40 = vrot.slane %v1566_v19, 4 }
 0x2ff   :  { %v575_v49 = vadd.f32 %v573_v42, %v490_v46 }
 0x300   :  { %v1564_v48 = vmul.f32 -1.442695, %v565_v45 }
 0x301   :  { %v1565_v51 = vmul.f32 -1.442695, %v575_v49 }
 0x302   :  { %2554 = vpow2.f32 %v1564_v48 }
 0x303   :  { %2556 = vpow2.f32 %v1565_v51 }
 0x30c   :  { %v2555_v54 = vpop.eup %2554 }
 0x30d   :  { %v569_v55 = vadd.f32 1.0, %v2555_v54  ;;  %v2557_v56 = vpop.eup %2556 }
 0x30e   :  { %v579_v57 = vadd.f32 1.0, %v2557_v56 }
 0x30f   :  { %2558 = vrcp.f32 %v569_v55 }
 0x310   :  { %2560 = vrcp.f32 %v579_v57  ;;  %v1569_v57 = vld [vmem:[%s3266_s0 + $0x18] sm:$0x3f] }
 0x319   :  { %v2559_v63 = vpop.eup %2558 }
 0x31a   :  { %v583_v0 = vmul.f32 %v2559_v63, %v582_v60  ;;  %v2561_v7 = vpop.eup %2560  ;;  %v915_v63 = vrot.slane %v1569_v57, 2 }
 0x31b   :  { %v588_v8 = vsub.f32 1.0, %v2561_v7  ;;  %v590_v14 = vmul.f32 %v2561_v7, %v2975_v36 }
 0x31c   :  { %v586_v1 = vadd.f32 %v584_v58, %v583_v0 }
 0x31e   :  { %2562 = vtanh.f32 %v586_v1 }
 0x328   :  { %v2563_v11 = vpop.eup %2562 }
 0x329   :  { %v589_v13 = vmul.f32 %v2563_v11, %v588_v8 }
 0x32b   :  { %v3020_v18 = vadd.f32 %v590_v14, %v589_v13 }
 0x32d   :  { %592 = vst [vmem:[#allocation3 + $0x4] sm:$0x3] %v3020_v18  ;;  %658 = vmatmul.mubr.f32.vlgmr.msra.gmra.mrb[6].mxu0 %v3020_v18  ;;  %1874 = vmatmul.mubr.f32.vlgmr.msra.gmra.mrb[6].mxu1 %v3020_v18 }
 0x32e   :  { %2278 = vmatpush1.bf16.msra.mxu0 %v2676_v9  ;;  %2309 = vmatpush3.bf16.msra.mxu1 %v2735_v29 }
 0x32f   :  { %2280 = vmatprep.subr.bf16.mxu0 %v2678_v10  ;;  %2310 = vmatprep.subr.bf16.mxu1 %v2618_v3 }
 0x330   :  { %828 = vmatprep.mubr.f32.mxu0 %v2619_v4  ;;  %1908 = vmatprep.mubr.msk.f32.mxu1 %vm2620_vm0, %v2619_v4 }
 0x332   :  { %2282 = vmatpush1.bf16.msra.mxu0 %v2694_v15  ;;  %2312 = vmatpush3.bf16.msra.mxu1 %v2750_v34 }
 0x333   :  { %2284 = vmatprep.subr.bf16.mxu0 %v2697_v16  ;;  %2313 = vmatprep.subr.bf16.mxu1 %v2618_v3 }
 0x336   :  { %2286 = vmatpush1.bf16.msra.mxu0 %v2712_v21  ;;  %2315 = vmatpush3.bf16.msra.mxu1 %v2778_v43 }
 0x337   :  { %2288 = vmatprep.subr.bf16.mxu0 %v2718_v23  ;;  %2316 = vmatprep.subr.bf16.mxu1 %v2618_v3 }
 0x33a   :  { %2290 = vmatpush1.bf16.msra.mxu0 %v2744_v32  ;;  %2318 = vmatpush3.bf16.msra.mxu1 %v2806_v52 }
 0x33b   :  { %2292 = vmatprep.subr.bf16.mxu0 %v2753_v35  ;;  %2319 = vmatprep.subr.bf16.mxu1 %v2618_v3 }
 0x33e   :  { %2294 = vmatpush1.bf16.msra.mxu0 %v2772_v41  ;;  %2321 = vmatpush3.bf16.msra.mxu1 %v2834_v61 }
 0x33f   :  { %2296 = vmatprep.subr.bf16.mxu0 %v2781_v44  ;;  %2322 = vmatprep.subr.bf16.mxu1 %v2618_v3 }
 0x342   :  { %2298 = vmatpush1.bf16.msra.mxu0 %v2800_v50  ;;  %2324 = vmatpush3.bf16.msra.mxu1 %v2853_v6 }
 0x343   :  { %2300 = vmatprep.subr.bf16.mxu0 %v2809_v53  ;;  %2325 = vmatprep.subr.bf16.mxu1 %v2618_v3 }
 0x346   :  { %2302 = vmatpush1.bf16.msra.mxu0 %v2828_v59  ;;  %2327 = vmatpush3.bf16.msra.mxu1 %v2867_v12 }
 0x347   :  { %2304 = vmatprep.subr.bf16.mxu0 %v2837_v62  ;;  %2328 = vmatprep.subr.bf16.mxu1 %v2618_v3 }
 0x34a   :  { %2306 = vmatpush1.bf16.msra.mxu0 %v2850_v2  ;;  %2330 = vmatpush3.bf16.msra.mxu1 %v2879_v17 }
 0x34b   :  { %2332 = vmatprep.subr.bf16.mxu0 %v2663_v5  ;;  %2363 = vmatprep.subr.bf16.mxu1 %v2618_v3 }
 0x400   :  { %v659_v20 = vpop.f32.mrb[6].mxu0  ;;  %v730_v22 = vpop.f32.mrb[6].mxu1 }
 0x401   :  { %v736_v25 = vadd.f32 %v1566_v19, %v659_v20  ;;  %v661_v26 = vpop.f32.mrb[7].mxu0  ;;  %v1875_v27 = vpop.f32.mrb[7].mxu1  ;;  %v753_v42 = vadd.f32 %v2926_v37, %v730_v22  ;;  %v926_v22 = vrot.slane %v1569_v57, 4 }
 0x402   :  { %v746_v30 = vadd.f32 %v744_v24, %v661_v26 }
 0x403   :  { %v1567_v28 = vmul.f32 -1.442695, %v736_v25 }
 0x404   :  { %v1568_v31 = vmul.f32 -1.442695, %v746_v30 }
 0x405   :  { %2564 = vpow2.f32 %v1567_v28 }
 0x406   :  { %2566 = vpow2.f32 %v1568_v31 }
 0x40f   :  { %v2565_v33 = vpop.eup %2564 }
 0x410   :  { %v740_v36 = vadd.f32 1.0, %v2565_v33  ;;  %v2567_v38 = vpop.eup %2566 }
 0x411   :  { %v750_v39 = vadd.f32 1.0, %v2567_v38 }
 0x412   :  { %2568 = vrcp.f32 %v740_v36 }
 0x413   :  { %2570 = vrcp.f32 %v750_v39  ;;  %v1572_v39 = vld [vmem:[%s3266_s0 + $0x1e] sm:$0x3f] }
 0x41c   :  { %v2569_v45 = vpop.eup %2568 }
 0x41d   :  { %v754_v46 = vmul.f32 %v2569_v45, %v753_v42  ;;  %v2571_v48 = vpop.eup %2570  ;;  %v1086_v45 = vrot.slane %v1572_v39, 2 }
 0x41e   :  { %v759_v49 = vsub.f32 1.0, %v2571_v48  ;;  %v761_v55 = vmul.f32 %v2571_v48, %v3020_v18 }
 0x41f   :  { %v757_v47 = vadd.f32 %v755_v40, %v754_v46 }
 0x421   :  { %2572 = vtanh.f32 %v757_v47 }
 0x42b   :  { %v2573_v51 = vpop.eup %2572 }
 0x42c   :  { %v760_v54 = vmul.f32 %v2573_v51, %v759_v49 }
 0x42e   :  { %v3065_v56 = vadd.f32 %v761_v55, %v760_v54 }
 0x430   :  { %763 = vst [vmem:[#allocation3 + $0x6] sm:$0x3] %v3065_v56  ;;  %829 = vmatmul.mubr.f32.vlgmr.msra.gmra.mrb[8].mxu0 %v3065_v56  ;;  %1909 = vmatmul.mubr.f32.vlgmr.msra.gmra.mrb[8].mxu1 %v3065_v56 }
 0x431   :  { %2334 = vmatpush1.bf16.msra.mxu0 %v2676_v9  ;;  %2365 = vmatpush3.bf16.msra.mxu1 %v2735_v29 }
 0x432   :  { %2336 = vmatprep.subr.bf16.mxu0 %v2678_v10  ;;  %2366 = vmatprep.subr.bf16.mxu1 %v2618_v3 }
 0x433   :  { %999 = vmatprep.mubr.f32.mxu0 %v2619_v4  ;;  %1943 = vmatprep.mubr.msk.f32.mxu1 %vm2620_vm0, %v2619_v4 }
 0x435   :  { %2338 = vmatpush1.bf16.msra.mxu0 %v2694_v15  ;;  %2368 = vmatpush3.bf16.msra.mxu1 %v2750_v34 }
 0x436   :  { %2340 = vmatprep.subr.bf16.mxu0 %v2697_v16  ;;  %2369 = vmatprep.subr.bf16.mxu1 %v2618_v3 }
 0x439   :  { %2342 = vmatpush1.bf16.msra.mxu0 %v2712_v21  ;;  %2371 = vmatpush3.bf16.msra.mxu1 %v2778_v43 }
 0x43a   :  { %2344 = vmatprep.subr.bf16.mxu0 %v2718_v23  ;;  %2372 = vmatprep.subr.bf16.mxu1 %v2618_v3 }
 0x43d   :  { %2346 = vmatpush1.bf16.msra.mxu0 %v2744_v32  ;;  %2374 = vmatpush3.bf16.msra.mxu1 %v2806_v52 }
 0x43e   :  { %2348 = vmatprep.subr.bf16.mxu0 %v2753_v35  ;;  %2375 = vmatprep.subr.bf16.mxu1 %v2618_v3 }
 0x441   :  { %2350 = vmatpush1.bf16.msra.mxu0 %v2772_v41  ;;  %2377 = vmatpush3.bf16.msra.mxu1 %v2834_v61 }
 0x442   :  { %2352 = vmatprep.subr.bf16.mxu0 %v2781_v44  ;;  %2378 = vmatprep.subr.bf16.mxu1 %v2618_v3 }
 0x445   :  { %2354 = vmatpush1.bf16.msra.mxu0 %v2800_v50  ;;  %2380 = vmatpush3.bf16.msra.mxu1 %v2853_v6 }
 0x446   :  { %2356 = vmatprep.subr.bf16.mxu0 %v2809_v53  ;;  %2381 = vmatprep.subr.bf16.mxu1 %v2618_v3 }
 0x449   :  { %2358 = vmatpush1.bf16.msra.mxu0 %v2828_v59  ;;  %2383 = vmatpush3.bf16.msra.mxu1 %v2867_v12 }
 0x44a   :  { %2360 = vmatprep.subr.bf16.mxu0 %v2837_v62  ;;  %2384 = vmatprep.subr.bf16.mxu1 %v2618_v3 }
 0x44d   :  { %2362 = vmatpush1.bf16.msra.mxu0 %v2850_v2  ;;  %2386 = vmatpush3.bf16.msra.mxu1 %v2879_v17 }
 0x44e   :  { %2388 = vmatprep.subr.bf16.mxu0 %v2663_v5  ;;  %2419 = vmatprep.subr.bf16.mxu1 %v2618_v3 }
 0x503   :  { %v830_v58 = vpop.f32.mrb[8].mxu0  ;;  %v901_v60 = vpop.f32.mrb[8].mxu1 }
 0x504   :  { %v907_v0 = vadd.f32 %v1569_v57, %v830_v58  ;;  %v832_v1 = vpop.f32.mrb[9].mxu0  ;;  %v1910_v7 = vpop.f32.mrb[9].mxu1  ;;  %v924_v24 = vadd.f32 %v2926_v37, %v901_v60  ;;  %v1097_v58 = vrot.slane %v1572_v39, 4 }
 0x505   :  { %v917_v11 = vadd.f32 %v915_v63, %v832_v1 }
 0x506   :  { %v1570_v8 = vmul.f32 -1.442695, %v907_v0 }
 0x507   :  { %v1571_v13 = vmul.f32 -1.442695, %v917_v11 }
 0x508   :  { %2574 = vpow2.f32 %v1570_v8 }
 0x509   :  { %2576 = vpow2.f32 %v1571_v13 }
 0x512   :  { %v2575_v14 = vpop.eup %2574 }
 0x513   :  { %v911_v18 = vadd.f32 1.0, %v2575_v14  ;;  %v2577_v19 = vpop.eup %2576 }
 0x514   :  { %v921_v20 = vadd.f32 1.0, %v2577_v19  ;;  %v1465_v19 = vld [vmem:[#allocation3] sm:$0xff] }
 0x515   :  { %2578 = vrcp.f32 %v911_v18 }
 0x516   :  { %2580 = vrcp.f32 %v921_v20  ;;  %v1449_v20 = vld [vmem:[%s3268_s3] sm:$0xff] }
 0x51f   :  { %v2579_v25 = vpop.eup %2578 }
 0x520   :  { %v925_v26 = vmul.f32 %v2579_v25, %v924_v24  ;;  %v2581_v28 = vpop.eup %2580  ;;  %v1451_v25 = vld [vmem:[%s3268_s3 + $0x10] sm:$0xff] }
 0x521   :  { %v930_v30 = vsub.f32 1.0, %v2581_v28  ;;  %v932_v36 = vmul.f32 %v2581_v28, %v3065_v56  ;;  %v1453_v28 = vld [vmem:[%s3268_s3 + $0x20] sm:$0xff] }
 0x522   :  { %v928_v27 = vadd.f32 %v926_v22, %v925_v26  ;;  %v1450_v22 = vld [vmem:[%s3268_s3 + $0x8] sm:$0xff]  ;;  %v1452_v26 = vld [vmem:[%s3268_s3 + $0x18] sm:$0xff] }
 0x523   :  { %v2499_v24 = vpack.c.bf16 %v1450_v22, %v1449_v20 }
 0x524   :  { %2582 = vtanh.f32 %v928_v27  ;;  %v2503_v27 = vpack.c.bf16 %v1452_v26, %v1451_v25 }
 0x52e   :  { %v2583_v31 = vpop.eup %2582 }
 0x52f   :  { %v931_v33 = vmul.f32 %v2583_v31, %v930_v30  ;;  %v1454_v30 = vld [vmem:[%s3268_s3 + $0x28] sm:$0xff] }
 0x530   :  { %v2507_v31 = vpack.c.bf16 %v1454_v30, %v1453_v28 }
 0x531   :  { %v3110_v38 = vadd.f32 %v932_v36, %v931_v33  ;;  %v1455_v33 = vld [vmem:[%s3268_s3 + $0x30] sm:$0xff]  ;;  %v1456_v36 = vld [vmem:[%s3268_s3 + $0x38] sm:$0xff] }
 0x533   :  { %934 = vst [vmem:[#allocation3 + $0x8] sm:$0x3] %v3110_v38  ;;  %1000 = vmatmul.mubr.f32.vlgmr.msra.gmra.mrb[10].mxu0 %v3110_v38  ;;  %1944 = vmatmul.mubr.f32.vlgmr.msra.gmra.mrb[10].mxu1 %v3110_v38 }
 0x534   :  { %2390 = vmatpush1.bf16.msra.mxu0 %v2676_v9  ;;  %2421 = vmatpush3.bf16.msra.mxu1 %v2735_v29 }
 0x535   :  { %2392 = vmatprep.subr.bf16.mxu0 %v2678_v10  ;;  %2422 = vmatprep.subr.bf16.mxu1 %v2618_v3 }
 0x536   :  { %1170 = vmatprep.mubr.f32.mxu0 %v2619_v4  ;;  %1978 = vmatprep.mubr.msk.f32.mxu1 %vm2620_vm0, %v2619_v4 }
 0x538   :  { %2394 = vmatpush1.bf16.msra.mxu0 %v2694_v15  ;;  %2424 = vmatpush3.bf16.msra.mxu1 %v2750_v34 }
 0x539   :  { %2396 = vmatprep.subr.bf16.mxu0 %v2697_v16  ;;  %2425 = vmatprep.subr.bf16.mxu1 %v2618_v3 }
 0x53c   :  { %2398 = vmatpush1.bf16.msra.mxu0 %v2712_v21  ;;  %2427 = vmatpush3.bf16.msra.mxu1 %v2778_v43 }
 0x53d   :  { %2400 = vmatprep.subr.bf16.mxu0 %v2718_v23  ;;  %2428 = vmatprep.subr.bf16.mxu1 %v2618_v3 }
 0x540   :  { %2402 = vmatpush1.bf16.msra.mxu0 %v2744_v32  ;;  %2430 = vmatpush3.bf16.msra.mxu1 %v2806_v52 }
 0x541   :  { %2404 = vmatprep.subr.bf16.mxu0 %v2753_v35  ;;  %2431 = vmatprep.subr.bf16.mxu1 %v2618_v3 }
 0x544   :  { %2406 = vmatpush1.bf16.msra.mxu0 %v2772_v41  ;;  %2433 = vmatpush3.bf16.msra.mxu1 %v2834_v61 }
 0x545   :  { %2408 = vmatprep.subr.bf16.mxu0 %v2781_v44  ;;  %2434 = vmatprep.subr.bf16.mxu1 %v2618_v3 }
 0x548   :  { %2410 = vmatpush1.bf16.msra.mxu0 %v2800_v50  ;;  %2436 = vmatpush3.bf16.msra.mxu1 %v2853_v6 }
 0x549   :  { %2412 = vmatprep.subr.bf16.mxu0 %v2809_v53  ;;  %2437 = vmatprep.subr.bf16.mxu1 %v2618_v3 }
 0x54c   :  { %2414 = vmatpush1.bf16.msra.mxu0 %v2828_v59  ;;  %2439 = vmatpush3.bf16.msra.mxu1 %v2867_v12 }
 0x54d   :  { %2416 = vmatprep.subr.bf16.mxu0 %v2837_v62  ;;  %2440 = vmatprep.subr.bf16.mxu1 %v2618_v3 }
 0x550   :  { %2418 = vmatpush1.bf16.msra.mxu0 %v2850_v2  ;;  %2442 = vmatpush3.bf16.msra.mxu1 %v2879_v17 }
 0x551   :  { %2444 = vmatprep.subr.bf16.mxu0 %v2663_v5  ;;  %2475 = vmatprep.subr.bf16.mxu1 %v2618_v3 }
 0x606   :  { %v1001_v40 = vpop.f32.mrb[10].mxu0  ;;  %v1072_v42 = vpop.f32.mrb[10].mxu1 }
 0x607   :  { %v1078_v46 = vadd.f32 %v1572_v39, %v1001_v40  ;;  %v1003_v47 = vpop.f32.mrb[11].mxu0  ;;  %v1945_v48 = vpop.f32.mrb[11].mxu1  ;;  %v1095_v60 = vadd.f32 %v2926_v37, %v1072_v42  ;;  %v1457_v39 = vld [vmem:[%s3268_s3 + $0x40] sm:$0xff]  ;;  %v1458_v40 = vld [vmem:[%s3268_s3 + $0x48] sm:$0xff] }
 0x608   :  { %v1088_v51 = vadd.f32 %v1086_v45, %v1003_v47  ;;  %v2515_v42 = vpack.c.bf16 %v1458_v40, %v1457_v39  ;;  %v1459_v45 = vld [vmem:[%s3268_s3 + $0x50] sm:$0xff]  ;;  %v1461_v48 = vld [vmem:[%s3268_s3 + $0x60] sm:$0xff] }
 0x609   :  { %v1573_v49 = vmul.f32 -1.442695, %v1078_v46  ;;  %v1460_v46 = vld [vmem:[%s3268_s3 + $0x58] sm:$0xff] }
 0x60a   :  { %v1574_v54 = vmul.f32 -1.442695, %v1088_v51  ;;  %v2519_v47 = vpack.c.bf16 %v1460_v46, %v1459_v45 }
 0x60b   :  { %2584 = vpow2.f32 %v1573_v49  ;;  %v1462_v49 = vld [vmem:[%s3268_s3 + $0x68] sm:$0xff] }
 0x60c   :  { %2586 = vpow2.f32 %v1574_v54  ;;  %v2523_v51 = vpack.c.bf16 %v1462_v49, %v1461_v48  ;;  %v1463_v54 = vld [vmem:[%s3268_s3 + $0x70] sm:$0xff] }
 0x615   :  { %v2585_v55 = vpop.eup %2584 }
 0x616   :  { %v1082_v56 = vadd.f32 1.0, %v2585_v55  ;;  %v2587_v5 = vpop.eup %2586  ;;  %v1464_v55 = vld [vmem:[%s3268_s3 + $0x78] sm:$0xff] }
 0x617   :  { %v1092_v57 = vadd.f32 1.0, %v2587_v5  ;;  %v1578_v5 = vld [vmem:[%s3266_s0 + $0x2a] sm:$0x3f] }
 0x618   :  { %2588 = vrcp.f32 %v1082_v56  ;;  %v2527_v56 = vpack.c.bf16 %v1464_v55, %v1463_v54 }
 0x619   :  { %2590 = vrcp.f32 %v1092_v57 }
 0x622   :  { %v2589_v63 = vpop.eup %2588 }
 0x623   :  { %v1096_v0 = vmul.f32 %v2589_v63, %v1095_v60  ;;  %v2591_v7 = vpop.eup %2590  ;;  %v1428_v60 = vrot.slane %v1578_v5, 2 }
 0x624   :  { %v1101_v8 = vsub.f32 1.0, %v2591_v7  ;;  %v1103_v14 = vmul.f32 %v2591_v7, %v3110_v38  ;;  %v2511_v38 = vpack.c.bf16 %v1456_v36, %v1455_v33 }
 0x625   :  { %v1099_v1 = vadd.f32 %v1097_v58, %v1096_v0 }
 0x627   :  { %2592 = vtanh.f32 %v1099_v1 }
 0x631   :  { %v2593_v11 = vpop.eup %2592 }
 0x632   :  { %v1102_v13 = vmul.f32 %v2593_v11, %v1101_v8 }
 0x634   :  { %v3155_v18 = vadd.f32 %v1103_v14, %v1102_v13 }
 0x636   :  { %1105 = vst [vmem:[#allocation3 + $0xa] sm:$0x3] %v3155_v18  ;;  %1171 = vmatmul.mubr.f32.vlgmr.msra.gmra.mrb[12].mxu0 %v3155_v18  ;;  %1979 = vmatmul.mubr.f32.vlgmr.msra.gmra.mrb[12].mxu1 %v3155_v18 }
 0x637   :  { %2446 = vmatpush1.bf16.msra.mxu0 %v2676_v9  ;;  %2477 = vmatpush3.bf16.msra.mxu1 %v2735_v29 }
 0x638   :  { %2448 = vmatprep.subr.bf16.mxu0 %v2678_v10  ;;  %2478 = vmatprep.subr.bf16.mxu1 %v2618_v3 }
 0x639   :  { %1341 = vmatprep.mubr.f32.mxu0 %v2619_v4  ;;  %2013 = vmatprep.mubr.msk.f32.mxu1 %vm2620_vm0, %v2619_v4  ;;  %v1575_v4 = vld [vmem:[%s3266_s0 + $0x24] sm:$0x3f] }
 0x63b   :  { %2450 = vmatpush1.bf16.msra.mxu0 %v2694_v15  ;;  %2480 = vmatpush3.bf16.msra.mxu1 %v2750_v34  ;;  %v1257_v15 = vrot.slane %v1575_v4, 2 }
 0x63c   :  { %2452 = vmatprep.subr.bf16.mxu0 %v2697_v16  ;;  %2481 = vmatprep.subr.bf16.mxu1 %v2618_v3 }
 0x63f   :  { %2454 = vmatpush1.bf16.msra.mxu0 %v2712_v21  ;;  %2483 = vmatpush3.bf16.msra.mxu1 %v2778_v43 }
 0x640   :  { %2456 = vmatprep.subr.bf16.mxu0 %v2718_v23  ;;  %2484 = vmatprep.subr.bf16.mxu1 %v2618_v3 }
 0x643   :  { %2458 = vmatpush1.bf16.msra.mxu0 %v2744_v32  ;;  %2486 = vmatpush3.bf16.msra.mxu1 %v2806_v52 }
 0x644   :  { %2460 = vmatprep.subr.bf16.mxu0 %v2753_v35  ;;  %2487 = vmatprep.subr.bf16.mxu1 %v2618_v3 }
 0x647   :  { %2462 = vmatpush1.bf16.msra.mxu0 %v2772_v41  ;;  %2489 = vmatpush3.bf16.msra.mxu1 %v2834_v61 }
 0x648   :  { %2464 = vmatprep.subr.bf16.mxu0 %v2781_v44  ;;  %2490 = vmatprep.subr.bf16.mxu1 %v2618_v3  ;;  %v1268_v44 = vrot.slane %v1575_v4, 4 }
 0x64b   :  { %2466 = vmatpush1.bf16.msra.mxu0 %v2800_v50  ;;  %2492 = vmatpush3.bf16.msra.mxu1 %v2853_v6 }
 0x64c   :  { %2468 = vmatprep.subr.bf16.mxu0 %v2809_v53  ;;  %2493 = vmatprep.subr.bf16.mxu1 %v2618_v3 }
 0x64f   :  { %2470 = vmatpush1.bf16.msra.mxu0 %v2828_v59  ;;  %2495 = vmatpush3.bf16.msra.mxu1 %v2867_v12 }
 0x650   :  { %2472 = vmatprep.subr.bf16.mxu0 %v2837_v62  ;;  %2496 = vmatprep.subr.bf16.mxu1 %v2618_v3 }
 0x653   :  { %2474 = vmatpush1.bf16.msra.mxu0 %v2850_v2  ;;  %2498 = vmatpush3.bf16.msra.mxu1 %v2879_v17 }
 0x654   :  { %2500 = vmatprep.subr.bf16.mxu0 %v2499_v24 }
 0x709   :  { %v1172_v9 = vpop.f32.mrb[12].mxu0  ;;  %v1243_v10 = vpop.f32.mrb[12].mxu1 }
 0x70a   :  { %v1249_v16 = vadd.f32 %v1575_v4, %v1172_v9  ;;  %v1174_v21 = vpop.f32.mrb[13].mxu0  ;;  %v1980_v23 = vpop.f32.mrb[13].mxu1  ;;  %v1266_v50 = vadd.f32 %v2926_v37, %v1243_v10  ;;  %v1439_v9 = vrot.slane %v1578_v5, 4 }
 0x70b   :  { %v1259_v32 = vadd.f32 %v1257_v15, %v1174_v21 }
 0x70c   :  { %v1576_v29 = vmul.f32 -1.442695, %v1249_v16 }
 0x70d   :  { %v1577_v34 = vmul.f32 -1.442695, %v1259_v32 }
 0x70e   :  { %2594 = vpow2.f32 %v1576_v29 }
 0x70f   :  { %2596 = vpow2.f32 %v1577_v34 }
 0x718   :  { %v2595_v3 = vpop.eup %2594 }
 0x719   :  { %v1253_v35 = vadd.f32 1.0, %v2595_v3  ;;  %v2597_v41 = vpop.eup %2596 }
 0x71a   :  { %v1263_v43 = vadd.f32 1.0, %v2597_v41 }
 0x71b   :  { %2598 = vrcp.f32 %v1253_v35 }
 0x71c   :  { %2600 = vrcp.f32 %v1263_v43 }
 0x725   :  { %v2599_v52 = vpop.eup %2598 }
 0x726   :  { %v1267_v53 = vmul.f32 %v2599_v52, %v1266_v50  ;;  %v2601_v61 = vpop.eup %2600 }
 0x727   :  { %v1272_v62 = vsub.f32 1.0, %v2601_v61  ;;  %v1274_v12 = vmul.f32 %v2601_v61, %v3155_v18 }
 0x728   :  { %v1270_v59 = vadd.f32 %v1268_v44, %v1267_v53 }
 0x72a   :  { %2602 = vtanh.f32 %v1270_v59 }
 0x734   :  { %v2603_v2 = vpop.eup %2602 }
 0x735   :  { %v1273_v6 = vmul.f32 %v2603_v2, %v1272_v62 }
 0x737   :  { %v3198_v17 = vadd.f32 %v1274_v12, %v1273_v6 }
 0x739   :  { %1276 = vst [vmem:[#allocation3 + $0xc] sm:$0x3] %v3198_v17  ;;  %1342 = vmatmul.mubr.f32.vlgmr.msra.gmra.mrb[14].mxu0 %v3198_v17  ;;  %2014 = vmatmul.mubr.f32.vlgmr.msra.gmra.mrb[14].mxu1 %v3198_v17 }
 0x73a   :  { %2048 = vmatprep.mubr.f32.mxu0 %v1465_v19  ;;  %2502 = vmatpush3.bf16.msra.mxu0 %v2499_v24 }
 0x73b   :  { %2504 = vmatprep.subr.bf16.mxu0 %v2503_v27 }
 0x73e   :  { %2506 = vmatpush3.bf16.msra.mxu0 %v2503_v27 }
 0x73f   :  { %2508 = vmatprep.subr.bf16.mxu0 %v2507_v31 }
 0x742   :  { %2510 = vmatpush3.bf16.msra.mxu0 %v2507_v31 }
 0x743   :  { %2512 = vmatprep.subr.bf16.mxu0 %v2511_v38 }
 0x746   :  { %2514 = vmatpush3.bf16.msra.mxu0 %v2511_v38 }
 0x747   :  { %2516 = vmatprep.subr.bf16.mxu0 %v2515_v42 }
 0x74a   :  { %2518 = vmatpush3.bf16.msra.mxu0 %v2515_v42 }
 0x74b   :  { %2520 = vmatprep.subr.bf16.mxu0 %v2519_v47 }
 0x74e   :  { %2522 = vmatpush3.bf16.msra.mxu0 %v2519_v47 }
 0x74f   :  { %2524 = vmatprep.subr.bf16.mxu0 %v2523_v51 }
 0x752   :  { %2526 = vmatpush3.bf16.msra.mxu0 %v2523_v51 }
 0x753   :  { %2528 = vmatprep.subr.bf16.mxu0 %v2527_v56 }
 0x756   :  { %2530 = vmatpush3.bf16.msra.mxu0 %v2527_v56 }
 0x80c   :  { %v1343_v57 = vpop.f32.mrb[14].mxu0  ;;  %v1414_v58 = vpop.f32.mrb[14].mxu1 }
 0x80d   :  { %v1420_v63 = vadd.f32 %v1578_v5, %v1343_v57  ;;  %v1345_v0 = vpop.f32.mrb[15].mxu0  ;;  %v2015_v1 = vpop.f32.mrb[15].mxu1  ;;  %v1437_v10 = vadd.f32 %v2926_v37, %v1414_v58  ;;  %v1581_v37 = vld [vmem:[%s3269_s4] ss:$0 sm:$0xff] }
 0x80e   :  { %v1430_v8 = vadd.f32 %v1428_v60, %v1345_v0 }
 0x80f   :  { %v1579_v7 = vmul.f32 -1.442695, %v1420_v63 }
 0x810   :  { %v1580_v11 = vmul.f32 -1.442695, %v1430_v8 }
 0x811   :  { %2604 = vpow2.f32 %v1579_v7 }
 0x812   :  { %2606 = vpow2.f32 %v1580_v11 }
 0x81b   :  { %v2605_v13 = vpop.eup %2604 }
 0x81c   :  { %v1424_v14 = vadd.f32 1.0, %v2605_v13  ;;  %v2607_v18 = vpop.eup %2606 }
 0x81d   :  { %v1434_v4 = vadd.f32 1.0, %v2607_v18 }
 0x81e   :  { %2608 = vrcp.f32 %v1424_v14 }
 0x81f   :  { %2610 = vrcp.f32 %v1434_v4 }
 0x828   :  { %v2609_v15 = vpop.eup %2608 }
 0x829   :  { %v1438_v16 = vmul.f32 %v2609_v15, %v1437_v10  ;;  %v2611_v23 = vpop.eup %2610 }
 0x82a   :  { %v1443_v29 = vsub.f32 1.0, %v2611_v23  ;;  %v1445_v3 = vmul.f32 %v2611_v23, %v3198_v17 }
 0x82b   :  { %v1441_v21 = vadd.f32 %v1439_v9, %v1438_v16 }
 0x82d   :  { %2612 = vtanh.f32 %v1441_v21 }
 0x837   :  { %v2613_v32 = vpop.eup %2612 }
 0x838   :  { %v1444_v34 = vmul.f32 %v2613_v32, %v1443_v29 }
 0x83a   :  { %v1446_v35 = vadd.f32 %v1445_v3, %v1444_v34 }
 0x83c   :  { %1447 = vst [vmem:[#allocation3 + $0xe] sm:$0x3] %v1446_v35  ;;  %1448 = vst [vmem:[#allocation2] sm:$0x3] %v1446_v35 }
 0x843   :  { %v1466_v41 = vld [vmem:[#allocation3 + $0x8] sm:$0xff] }
 0x844   :  { %2049 = vmatmul.mubr.f32.vlgmr.msra.gmra.mrb[16].mxu0 %v1466_v41 }
 0x917   :  { %v2050_v43 = vpop.f32.mrb[16].mxu0 }
 0x918   :  { %v1546_v44 = vadd.f32 %v2050_v43, %v1581_v37  ;;  %v1540_v50 = vpop.f32.mrb[17].mxu0 }
 0x919   :  { %v1541_v52 = vadd.f32 %v1581_v37, %v1540_v50 }
 0x91a   :  { %2614 = vtanh.f32 %v1546_v44 }
 0x91b   :  { %2616 = vtanh.f32 %v1541_v52 }
 0x924   :  { %v2615_v53 = vpop.eup %2614 }
 0x925   :  { %v2617_v59 = vpop.eup %2616  ;;  %1552 = vst [vmem:[%s3270_s5 + $0x8] sm:$0xff] %v2615_v53 }
 0x926   :  { %1551 = vst [vmem:[%s3270_s5] sm:$0xff] %v2617_v59 }

</bundles_post_ra>
